<compile_context>
chip_gen: v6e
topology: v6e:2x2x1
jax: 0.10.0
libtpu: 0.0.40
codegen_flags: <defaults>
</compile_context>

<pallas_src>
import functools

import jax
import jax.numpy as jnp
from jax.experimental import pallas as pl
from jax.experimental.pallas import tpu as pltpu


def _conv3x3_kernel(x_ref, w_ref, b_ref, o_ref, *, TH, W, Cin, Cout, fuse_taps):
    """One (batch, row-tile) step of ReflectionPad2d(1) + Conv2d(3x3).

    x_ref: (TH+2, W+2, Cin)  padded input rows (compute dtype)
    w_ref: (9, Cin, Cout)    weights, tap-major (t = kh*3 + kw)
    b_ref: (1, Cout)         bias (f32)
    o_ref: (TH, W, Cout)     output tile
    """
    xt = x_ref[...]
    if fuse_taps:
        # Large-channel path (Cin % 128 == 0): the lane-axis concat is
        # tile-aligned, so a single MXU dot with K = 9*Cin is cheapest.
        patches = [xt[kh:kh + TH, kw:kw + W, :]
                   for kh in range(3) for kw in range(3)]
        lhs = jnp.concatenate(patches, axis=-1).reshape(TH * W, 9 * Cin)
        acc = jnp.dot(lhs, w_ref[...].reshape(9 * Cin, Cout),
                      preferred_element_type=jnp.float32)
    else:
        # General path: nine accumulated dots (K = Cin) against weight slices.
        # No lane-axis concat and no 9x-input im2col buffer; on v7x the tap
        # accumulation folds into the MXU result buffer (MRB).
        acc = jnp.zeros((TH * W, Cout), dtype=jnp.float32)
        t = 0
        for kh in range(3):
            for kw in range(3):
                lhs = xt[kh:kh + TH, kw:kw + W, :].reshape(TH * W, Cin)
                acc = acc + jnp.dot(lhs, w_ref[t],
                                    preferred_element_type=jnp.float32)
                t += 1
    acc = acc + b_ref[...]                       # (1, Cout) broadcast, f32
    o_ref[...] = acc.reshape(TH, W, Cout).astype(o_ref.dtype)


def _vmem_capacity_bytes():
    try:
        return int(pltpu.get_tpu_info().vmem_capacity_bytes)
    except Exception:
        return 64 << 20        # conservative (v7x-sized) fallback


def _step_vmem_bytes(TH, W, Cin, Cout, cd_bytes, out_bytes):
    inp = 2 * (TH + 2) * (W + 2) * Cin * cd_bytes      # double-buffered input
    out = 2 * TH * W * Cout * out_bytes                # double-buffered output
    wts = 9 * Cin * Cout * cd_bytes + 512              # resident weights + bias
    liv = TH * W * Cin * cd_bytes + TH * W * Cout * 4  # per-tap lhs + f32 acc
    return inp + out + wts + liv


def _choose_tile_h(N, H, W, Cin, Cout, cd_bytes, out_bytes, budget):
    divisors = [d for d in range(H, 0, -1) if H % d == 0]
    fitting = [d for d in divisors
               if _step_vmem_bytes(d, W, Cin, Cout, cd_bytes, out_bytes) <= budget]
    if not fitting:
        return 1
    # Prefer the largest tile that still yields >= 2 grid steps (pipeline depth
    # + both v7x TensorCores); never shrink further just to add depth.
    for d in fitting:
        if N * (H // d) >= 2:
            return d
    return fitting[0]


def conv3x3_pallas(x, weight, bias, use_refl=True, *,
                   compute_dtype=jnp.bfloat16, out_dtype=None, tile_h=None,
                   input_format="NCHW", output_format="NCHW",
                   vmem_budget_bytes=None):
    """ReflectionPad2d(1)/ZeroPad2d(1) + Conv2d(Cin, Cout, 3) forward.

    x: (N, Cin, H, W) if input_format=="NCHW" else (N, H, W, Cin)
    weight: (Cout, Cin, 3, 3); bias: (Cout,)
    Returns NCHW (or NHWC) output matching the PyTorch Conv3x3 module.
    """
    in_dtype = x.dtype
    if input_format == "NCHW":
        N, Cin, H, W = x.shape
        x = jnp.transpose(x, (0, 2, 3, 1))   # NHWC; XLA fuses this with the pad
    else:
        N, H, W, Cin = x.shape
    Cout = weight.shape[0]
    if use_refl and (H < 2 or W < 2):
        raise ValueError("ReflectionPad2d(1) requires H >= 2 and W >= 2.")

    cd = jnp.dtype(compute_dtype)
    od = jnp.dtype(out_dtype) if out_dtype is not None else jnp.dtype(in_dtype)
    cd_bytes, od_bytes = cd.itemsize, od.itemsize

    # One pad pass (cast to the compute dtype first to halve its HBM traffic).
    xc = x.astype(cd)
    xp = jnp.pad(xc, ((0, 0), (1, 1), (1, 1), (0, 0)),
                 mode="reflect" if use_refl else "constant")

    vmem_cap = _vmem_capacity_bytes()
    budget = (vmem_budget_bytes if vmem_budget_bytes is not None
              else int(0.4 * vmem_cap))
    if tile_h is not None:
        if H % tile_h != 0:
            raise ValueError("tile_h must divide H")
        TH = int(tile_h)
    else:
        TH = _choose_tile_h(N, H, W, Cin, Cout, cd_bytes, od_bytes, budget)
    nH = H // TH

    if nH == 1:
        # Whole (padded) image per step: zero halo duplication.
        x_in = xp                                        # (N, H+2, W+2, Cin)
        x_spec = pl.BlockSpec((None, H + 2, W + 2, Cin),
                              lambda n, t: (n, 0, 0, 0))
    else:
        # Huge-image fallback: overlapping (TH+2)-row windows of the padded
        # image (only the 2 halo rows per tile are duplicated).
        h_idx = jnp.arange(nH)[:, None] * TH + jnp.arange(TH + 2)[None, :]
        x_in = xp[:, h_idx]                              # (N, nH, TH+2, W+2, Cin)
        x_spec = pl.BlockSpec((None, None, TH + 2, W + 2, Cin),
                              lambda n, t: (n, t, 0, 0, 0))

    # Weights: (Cout, Cin, 3, 3) -> (3, 3, Cin, Cout) -> (9, Cin, Cout),
    # tap-major (kh, kw) matching the kernel's loop order.
    fuse_taps = (Cin % 128 == 0)
    w3 = jnp.transpose(weight, (2, 3, 1, 0)).reshape(9, Cin, Cout).astype(cd)
    b2 = bias.reshape(1, Cout).astype(jnp.float32)

    est = _step_vmem_bytes(TH, W, Cin, Cout, cd_bytes, od_bytes)
    vmem_limit = int(min(0.9 * vmem_cap, max(32 << 20, 2 * est + (8 << 20))))

    flops = 2 * N * H * W * 9 * Cin * Cout + N * H * W * Cout
    bytes_accessed = int(x_in.size * cd_bytes + w3.size * cd_bytes
                         + b2.size * 4 + N * H * W * Cout * od_bytes)

    kernel = functools.partial(_conv3x3_kernel, TH=TH, W=W, Cin=Cin, Cout=Cout,
                               fuse_taps=fuse_taps)

    out_nhwc = pl.pallas_call(
        kernel,
        out_shape=jax.ShapeDtypeStruct((N, H, W, Cout), od),
        grid_spec=pltpu.PrefetchScalarGridSpec(
            num_scalar_prefetch=0,
            grid=(N, nH),
            in_specs=[
                x_spec,
                pl.BlockSpec((9, Cin, Cout), lambda n, t: (0, 0, 0)),
                pl.BlockSpec((1, Cout), lambda n, t: (0, 0)),
            ],
            out_specs=pl.BlockSpec((None, TH, W, Cout),
                                   lambda n, t: (n, t, 0, 0)),
        ),
        compiler_params=pltpu.CompilerParams(
            dimension_semantics=("parallel", "parallel"),
            vmem_limit_bytes=vmem_limit),
        cost_estimate=pl.CostEstimate(flops=flops, transcendentals=0,
                                      bytes_accessed=bytes_accessed),
    )(x_in, w3, b2)

    if output_format == "NCHW":
        return jnp.transpose(out_nhwc, (0, 3, 1, 2))
    return out_nhwc


def conv3x3_reference(x_nchw, weight, bias, use_refl=True):
    """Pure-JAX f32 reference (ReflectionPad2d(1) + Conv2d 3x3, valid)."""
    mode = "reflect" if use_refl else "constant"
    xp = jnp.pad(x_nchw, ((0, 0), (0, 0), (1, 1), (1, 1)), mode=mode)
    out = jax.lax.conv_general_dilated(
        xp, weight, window_strides=(1, 1), padding="VALID",
        dimension_numbers=("NCHW", "OIHW", "NCHW"),
        precision=jax.lax.Precision.HIGHEST)
    return out + bias.reshape(1, -1, 1, 1)


if __name__ == "__main__":
    # Small shapes consistent with the module: N=2, Cin=4, Cout=8, H=W=16.
    N, Cin, Cout, H, W = 2, 4, 8, 16, 16

    key = jax.random.PRNGKey(0)
    kx, kw, kb = jax.random.split(key, 3)

    x = jax.random.normal(kx, (N, Cin, H, W), dtype=jnp.float32)
    fan_in = Cin * 3 * 3
    bound = 1.0 / (fan_in ** 0.5)
    weight = jax.random.uniform(kw, (Cout, Cin, 3, 3),
                                minval=-bound, maxval=bound, dtype=jnp.float32)
    bias = jax.random.uniform(kb, (Cout,),
                              minval=-bound, maxval=bound, dtype=jnp.float32)

    ref_refl = conv3x3_reference(x, weight, bias, use_refl=True)
    ref_zero = conv3x3_reference(x, weight, bias, use_refl=False)

    # 1) Default path: reflect pad, bf16 MXU operands, auto tile (full image).
    out1 = jax.block_until_ready(conv3x3_pallas(x, weight, bias, use_refl=True))
    assert out1.shape == (N, Cout, H, W)
    assert jnp.allclose(out1, ref_refl, atol=2e-2, rtol=2e-2), "bf16 path mismatch"

    # 2) f32-parity path with forced row tiling (exercises the halo'd grid).
    out2 = jax.block_until_ready(
        conv3x3_pallas(x, weight, bias, use_refl=True,
                       compute_dtype=jnp.float32, tile_h=8))
    assert jnp.allclose(out2, ref_refl, atol=1e-4, rtol=1e-4), "f32 path mismatch"

    # 3) Zero-padding variant (use_refl=False).
    out3 = jax.block_until_ready(conv3x3_pallas(x, weight, bias, use_refl=False))
    assert jnp.allclose(out3, ref_zero, atol=2e-2, rtol=2e-2), "zero-pad mismatch"

    print("KERNEL_OK")
</pallas_src>

<mosaic_0001>
module attributes {stable_mosaic.version = 11 : i64} {
  func.func @_conv3x3_kernel(%arg0: i32, %arg1: i32, %arg2: memref<1x18x18x4xbf16, #tpu.memory_space<vmem>>, %arg3: memref<9x4x8xbf16, #tpu.memory_space<vmem>>, %arg4: memref<1x8xf32, #tpu.memory_space<vmem>>, %arg5: memref<1x16x16x8xf32, #tpu.memory_space<vmem>>) attributes {dimension_semantics = [#tpu.dimension_semantics<parallel>, #tpu.dimension_semantics<parallel>], iteration_bounds = array<i64: 2, 1>, scalar_prefetch = 0 : i64, scratch_operands = 0 : i64, tpu.core_type = #tpu.core_type<tc>, window_params = [{transform_indices = @transform_0, window_bounds = array<i64: 1, 18, 18, 4>}, {pipeline_mode = #tpu.pipeline_mode<synchronous>, transform_indices = @transform_1, window_bounds = array<i64: 9, 4, 8>}, {pipeline_mode = #tpu.pipeline_mode<synchronous>, transform_indices = @transform_2, window_bounds = array<i64: 1, 8>}, {transform_indices = @transform_3, window_bounds = array<i64: 1, 16, 16, 8>}]} {
    %c0 = arith.constant 0 : index
    %c0_0 = arith.constant 0 : index
    %c0_1 = arith.constant 0 : index
    %c0_2 = arith.constant 0 : index
    %0 = vector.load %arg2[%c0, %c0_0, %c0_1, %c0_2] : memref<1x18x18x4xbf16, #tpu.memory_space<vmem>>, vector<1x18x18x4xbf16>
    %1 = vector.shape_cast %0 : vector<1x18x18x4xbf16> to vector<18x18x4xbf16>
    %cst = arith.constant 0.000000e+00 : f32
    %2 = vector.broadcast %cst : f32 to vector<256x8xf32>
    %3 = vector.extract_strided_slice %1 {offsets = [0, 0, 0], sizes = [16, 16, 4], strides = [1, 1, 1]} : vector<18x18x4xbf16> to vector<16x16x4xbf16>
    %4 = vector.shape_cast %3 : vector<16x16x4xbf16> to vector<256x4xbf16>
    %c0_3 = arith.constant 0 : index
    %c0_4 = arith.constant 0 : index
    %c0_5 = arith.constant 0 : index
    %5 = vector.load %arg3[%c0_3, %c0_4, %c0_5] : memref<9x4x8xbf16, #tpu.memory_space<vmem>>, vector<1x4x8xbf16>
    %6 = vector.shape_cast %5 : vector<1x4x8xbf16> to vector<4x8xbf16>
    %cst_6 = arith.constant dense<0.000000e+00> : vector<256x8xf32>
    %7 = tpu.matmul %4, %6, %cst_6 {dimension_numbers = #tpu.dot_dimension_numbers<[1], [0], [0], [1], [0, 0, 1, 1], [], []>} : vector<256x4xbf16>, vector<4x8xbf16>, vector<256x8xf32> -> vector<256x8xf32>
    %8 = arith.addf %2, %7 : vector<256x8xf32>
    %9 = vector.extract_strided_slice %1 {offsets = [0, 1, 0], sizes = [16, 16, 4], strides = [1, 1, 1]} : vector<18x18x4xbf16> to vector<16x16x4xbf16>
    %10 = vector.shape_cast %9 : vector<16x16x4xbf16> to vector<256x4xbf16>
    %c1 = arith.constant 1 : index
    %c0_7 = arith.constant 0 : index
    %c0_8 = arith.constant 0 : index
    %11 = vector.load %arg3[%c1, %c0_7, %c0_8] : memref<9x4x8xbf16, #tpu.memory_space<vmem>>, vector<1x4x8xbf16>
    %12 = vector.shape_cast %11 : vector<1x4x8xbf16> to vector<4x8xbf16>
    %cst_9 = arith.constant dense<0.000000e+00> : vector<256x8xf32>
    %13 = tpu.matmul %10, %12, %cst_9 {dimension_numbers = #tpu.dot_dimension_numbers<[1], [0], [0], [1], [0, 0, 1, 1], [], []>} : vector<256x4xbf16>, vector<4x8xbf16>, vector<256x8xf32> -> vector<256x8xf32>
    %14 = arith.addf %8, %13 : vector<256x8xf32>
    %15 = vector.extract_strided_slice %1 {offsets = [0, 2, 0], sizes = [16, 16, 4], strides = [1, 1, 1]} : vector<18x18x4xbf16> to vector<16x16x4xbf16>
    %16 = vector.shape_cast %15 : vector<16x16x4xbf16> to vector<256x4xbf16>
    %c2 = arith.constant 2 : index
    %c0_10 = arith.constant 0 : index
    %c0_11 = arith.constant 0 : index
    %17 = vector.load %arg3[%c2, %c0_10, %c0_11] : memref<9x4x8xbf16, #tpu.memory_space<vmem>>, vector<1x4x8xbf16>
    %18 = vector.shape_cast %17 : vector<1x4x8xbf16> to vector<4x8xbf16>
    %cst_12 = arith.constant dense<0.000000e+00> : vector<256x8xf32>
    %19 = tpu.matmul %16, %18, %cst_12 {dimension_numbers = #tpu.dot_dimension_numbers<[1], [0], [0], [1], [0, 0, 1, 1], [], []>} : vector<256x4xbf16>, vector<4x8xbf16>, vector<256x8xf32> -> vector<256x8xf32>
    %20 = arith.addf %14, %19 : vector<256x8xf32>
    %21 = vector.extract_strided_slice %1 {offsets = [1, 0, 0], sizes = [16, 16, 4], strides = [1, 1, 1]} : vector<18x18x4xbf16> to vector<16x16x4xbf16>
    %22 = vector.shape_cast %21 : vector<16x16x4xbf16> to vector<256x4xbf16>
    %c3 = arith.constant 3 : index
    %c0_13 = arith.constant 0 : index
    %c0_14 = arith.constant 0 : index
    %23 = vector.load %arg3[%c3, %c0_13, %c0_14] : memref<9x4x8xbf16, #tpu.memory_space<vmem>>, vector<1x4x8xbf16>
    %24 = vector.shape_cast %23 : vector<1x4x8xbf16> to vector<4x8xbf16>
    %cst_15 = arith.constant dense<0.000000e+00> : vector<256x8xf32>
    %25 = tpu.matmul %22, %24, %cst_15 {dimension_numbers = #tpu.dot_dimension_numbers<[1], [0], [0], [1], [0, 0, 1, 1], [], []>} : vector<256x4xbf16>, vector<4x8xbf16>, vector<256x8xf32> -> vector<256x8xf32>
    %26 = arith.addf %20, %25 : vector<256x8xf32>
    %27 = vector.extract_strided_slice %1 {offsets = [1, 1, 0], sizes = [16, 16, 4], strides = [1, 1, 1]} : vector<18x18x4xbf16> to vector<16x16x4xbf16>
    %28 = vector.shape_cast %27 : vector<16x16x4xbf16> to vector<256x4xbf16>
    %c4 = arith.constant 4 : index
    %c0_16 = arith.constant 0 : index
    %c0_17 = arith.constant 0 : index
    %29 = vector.load %arg3[%c4, %c0_16, %c0_17] : memref<9x4x8xbf16, #tpu.memory_space<vmem>>, vector<1x4x8xbf16>
    %30 = vector.shape_cast %29 : vector<1x4x8xbf16> to vector<4x8xbf16>
    %cst_18 = arith.constant dense<0.000000e+00> : vector<256x8xf32>
    %31 = tpu.matmul %28, %30, %cst_18 {dimension_numbers = #tpu.dot_dimension_numbers<[1], [0], [0], [1], [0, 0, 1, 1], [], []>} : vector<256x4xbf16>, vector<4x8xbf16>, vector<256x8xf32> -> vector<256x8xf32>
    %32 = arith.addf %26, %31 : vector<256x8xf32>
    %33 = vector.extract_strided_slice %1 {offsets = [1, 2, 0], sizes = [16, 16, 4], strides = [1, 1, 1]} : vector<18x18x4xbf16> to vector<16x16x4xbf16>
    %34 = vector.shape_cast %33 : vector<16x16x4xbf16> to vector<256x4xbf16>
    %c5 = arith.constant 5 : index
    %c0_19 = arith.constant 0 : index
    %c0_20 = arith.constant 0 : index
    %35 = vector.load %arg3[%c5, %c0_19, %c0_20] : memref<9x4x8xbf16, #tpu.memory_space<vmem>>, vector<1x4x8xbf16>
    %36 = vector.shape_cast %35 : vector<1x4x8xbf16> to vector<4x8xbf16>
    %cst_21 = arith.constant dense<0.000000e+00> : vector<256x8xf32>
    %37 = tpu.matmul %34, %36, %cst_21 {dimension_numbers = #tpu.dot_dimension_numbers<[1], [0], [0], [1], [0, 0, 1, 1], [], []>} : vector<256x4xbf16>, vector<4x8xbf16>, vector<256x8xf32> -> vector<256x8xf32>
    %38 = arith.addf %32, %37 : vector<256x8xf32>
    %39 = vector.extract_strided_slice %1 {offsets = [2, 0, 0], sizes = [16, 16, 4], strides = [1, 1, 1]} : vector<18x18x4xbf16> to vector<16x16x4xbf16>
    %40 = vector.shape_cast %39 : vector<16x16x4xbf16> to vector<256x4xbf16>
    %c6 = arith.constant 6 : index
    %c0_22 = arith.constant 0 : index
    %c0_23 = arith.constant 0 : index
    %41 = vector.load %arg3[%c6, %c0_22, %c0_23] : memref<9x4x8xbf16, #tpu.memory_space<vmem>>, vector<1x4x8xbf16>
    %42 = vector.shape_cast %41 : vector<1x4x8xbf16> to vector<4x8xbf16>
    %cst_24 = arith.constant dense<0.000000e+00> : vector<256x8xf32>
    %43 = tpu.matmul %40, %42, %cst_24 {dimension_numbers = #tpu.dot_dimension_numbers<[1], [0], [0], [1], [0, 0, 1, 1], [], []>} : vector<256x4xbf16>, vector<4x8xbf16>, vector<256x8xf32> -> vector<256x8xf32>
    %44 = arith.addf %38, %43 : vector<256x8xf32>
    %45 = vector.extract_strided_slice %1 {offsets = [2, 1, 0], sizes = [16, 16, 4], strides = [1, 1, 1]} : vector<18x18x4xbf16> to vector<16x16x4xbf16>
    %46 = vector.shape_cast %45 : vector<16x16x4xbf16> to vector<256x4xbf16>
    %c7 = arith.constant 7 : index
    %c0_25 = arith.constant 0 : index
    %c0_26 = arith.constant 0 : index
    %47 = vector.load %arg3[%c7, %c0_25, %c0_26] : memref<9x4x8xbf16, #tpu.memory_space<vmem>>, vector<1x4x8xbf16>
    %48 = vector.shape_cast %47 : vector<1x4x8xbf16> to vector<4x8xbf16>
    %cst_27 = arith.constant dense<0.000000e+00> : vector<256x8xf32>
    %49 = tpu.matmul %46, %48, %cst_27 {dimension_numbers = #tpu.dot_dimension_numbers<[1], [0], [0], [1], [0, 0, 1, 1], [], []>} : vector<256x4xbf16>, vector<4x8xbf16>, vector<256x8xf32> -> vector<256x8xf32>
    %50 = arith.addf %44, %49 : vector<256x8xf32>
    %51 = vector.extract_strided_slice %1 {offsets = [2, 2, 0], sizes = [16, 16, 4], strides = [1, 1, 1]} : vector<18x18x4xbf16> to vector<16x16x4xbf16>
    %52 = vector.shape_cast %51 : vector<16x16x4xbf16> to vector<256x4xbf16>
    %c8 = arith.constant 8 : index
    %c0_28 = arith.constant 0 : index
    %c0_29 = arith.constant 0 : index
    %53 = vector.load %arg3[%c8, %c0_28, %c0_29] : memref<9x4x8xbf16, #tpu.memory_space<vmem>>, vector<1x4x8xbf16>
    %54 = vector.shape_cast %53 : vector<1x4x8xbf16> to vector<4x8xbf16>
    %cst_30 = arith.constant dense<0.000000e+00> : vector<256x8xf32>
    %55 = tpu.matmul %52, %54, %cst_30 {dimension_numbers = #tpu.dot_dimension_numbers<[1], [0], [0], [1], [0, 0, 1, 1], [], []>} : vector<256x4xbf16>, vector<4x8xbf16>, vector<256x8xf32> -> vector<256x8xf32>
    %56 = arith.addf %50, %55 : vector<256x8xf32>
    %c0_31 = arith.constant 0 : index
    %c0_32 = arith.constant 0 : index
    %57 = vector.load %arg4[%c0_31, %c0_32] : memref<1x8xf32, #tpu.memory_space<vmem>>, vector<1x8xf32>
    %58 = vector.broadcast %57 : vector<1x8xf32> to vector<256x8xf32>
    %59 = arith.addf %56, %58 : vector<256x8xf32>
    %60 = vector.shape_cast %59 : vector<256x8xf32> to vector<16x16x8xf32>
    %c0_33 = arith.constant 0 : index
    %c0_34 = arith.constant 0 : index
    %c0_35 = arith.constant 0 : index
    %c0_36 = arith.constant 0 : index
    %61 = vector.load %arg5[%c0_33, %c0_34, %c0_35, %c0_36] : memref<1x16x16x8xf32, #tpu.memory_space<vmem>>, vector<1x16x16x8xf32>
    %62 = vector.shape_cast %61 : vector<1x16x16x8xf32> to vector<16x16x8xf32>
    %63 = vector.shape_cast %60 : vector<16x16x8xf32> to vector<1x16x16x8xf32>
    tpu.vector_store %arg5[%c0_33, %c0_34, %c0_35, %c0_36], %63 {strides = array<i32>} : memref<1x16x16x8xf32, #tpu.memory_space<vmem>>, vector<1x16x16x8xf32>,
    return
  }
  func.func @transform_0(%arg0: i32, %arg1: i32) -> (i32, i32, i32, i32) {
    %c0_i32 = arith.constant 0 : i32
    %c0_i32_0 = arith.constant 0 : i32
    %c0_i32_1 = arith.constant 0 : i32
    %c0_i32_2 = arith.constant 0 : i32
    return %arg0, %c0_i32, %c0_i32_0, %c0_i32_1 : i32, i32, i32, i32
  }
  func.func @transform_1(%arg0: i32, %arg1: i32) -> (i32, i32, i32) {
    %c0_i32 = arith.constant 0 : i32
    %c0_i32_0 = arith.constant 0 : i32
    %c0_i32_1 = arith.constant 0 : i32
    %c0_i32_2 = arith.constant 0 : i32
    return %c0_i32, %c0_i32_0, %c0_i32_1 : i32, i32, i32
  }
  func.func @transform_2(%arg0: i32, %arg1: i32) -> (i32, i32) {
    %c0_i32 = arith.constant 0 : i32
    %c0_i32_0 = arith.constant 0 : i32
    %c0_i32_1 = arith.constant 0 : i32
    return %c0_i32, %c0_i32_0 : i32, i32
  }
  func.func @transform_3(%arg0: i32, %arg1: i32) -> (i32, i32, i32, i32) {
    %c0_i32 = arith.constant 0 : i32
    %c0_i32_0 = arith.constant 0 : i32
    %c0_i32_1 = arith.constant 0 : i32
    return %arg0, %arg1, %c0_i32, %c0_i32_0 : i32, i32, i32, i32
  }
}

</mosaic_0001>

<bundles_post_ra>
// kernel: tpu_custom_call.1
= control target key start
LH: loop header
LB: loop body
LE: loop exit
PB: predicated region body
PF: predicated region fallthrough
CT: control target
= control target key end

     0   :  { %s3865_s12 = smov 0   ;;  %s3867_s13 = smov 0   ;;  %s5421_s0 = inlined_call_operand.vmem [shape: bf16[2,18,18,4], index: 0, kind: input, shape index: {}]   ;;  %s5422_s1 = inlined_call_operand.vmem [shape: bf16[9,4,8], index: 1, kind: input, shape index: {}]   ;;  %s5423_s2 = inlined_call_operand.vmem [shape: f32[1,8], index: 2, kind: input, shape index: {}]   ;;  %s5424_s3 = inlined_call_operand.vmem [shape: f32[2,16,16,8], index: 3, kind: output, shape index: {}]  }
   0x1   :  { %s3869_s14 = smov 0  }
   0x2 LB: > { %s25_s15 = sadd.s32 1, %s3839_s13  ;;  %p3075_p0 = scmp.ge.s32.totalorder %s3843_s14, 1  ;;  %s3843_s14 = sphi %s3869_s14, %s13_s14   ;;  %s3839_s13 = sphi %s3867_s13, %s5626_s13   ;;  %s3835_s12 = sphi %s3865_s12, %s5625_s12  }
   0x3   : > { %p27_p1 = scmp.ge.s32.totalorder %s25_s15, 2  ;;  %p151_p2 = scmp.lt.s32.totalorder %s3843_s14, 3 }
   0x5   : > { %s5628_s15 = smov (%p27_p1, %s25_s15), 0  ;;  %p152_p3 = pnand %p3075_p0, %p151_p2 }
   0x7   : > { %155 = sbr.rel (%p152_p3) target bundleno = 555 (0x22b), region = 32 }
   0xc   : > { %v3079_v0 = vld [vmem:[%s5422_s1 + $0x2] sm:$0x3]  ;;  %vm738_vm0 = vcmask 1041408   ;;  %p180_p4 = scmp.lt.s32.totalorder %s3835_s12, 1  ;;  %v251_v2 = vld [vmem:[%s5422_s1] sm:$0x3] }
   0xd   : > { %3769 = vmatprep.subr.msk.bf16.mxu1 %vm738_vm0, %v3079_v0  ;;  %3768 = vmatprep.subr.msk.bf16.mxu0 %vm738_vm0, %v3079_v0  ;;  %v740_v1 = vsel %vm738_vm0, %v3079_v0, 0  ;;  %v3160_v3 = vld [vmem:[%s5422_s1 + $0x4] sm:$0x3]  ;;  %vm252_vm1 = vsmask.f32 3328  ;;  %v3906_v4 = vsel %vm738_vm0, %v251_v2, 0 }
   0xe   : > { %3767 = vmatpush3.bf16.msra.mxu1 %v740_v1  ;;  %3461 = vmatpush3.bf16.msra.mxu0 %v740_v1  ;;  %s5630_s12 = smov (!%p180_p4, %s3835_s12), 1  ;;  %vm253_vm2 = vsmask.f32 7440  ;;  %v3909_v5 = vsel %vm738_vm0, %v3160_v3, 0  ;;  %vm689_vm3 = vcmask 31744   ;;  %v5468_v32 = vmov 0 }
   0xf   : > { %3770 = vmatprep.subr.msk.bf16.mxu1 %vm738_vm0, %v251_v2  ;;  %3771 = vmatprep.subr.msk.bf16.mxu0 %vm738_vm0, %v3160_v3  ;;  %s3778_s22 = smul.u32 216, %s5630_s12  ;;  %vm3948_vm4 = vmor %vm252_vm1, %vm253_vm2  ;;  %vm1211_vm5 = vcmask 1042432   ;;  %vm1212_vm6 = vcmask 1046532   ;;  %s3306_s11 = sshll.u32 %s5630_s12, 8  ;;  %vm2951_vm8 = vcmask 64512  }
  0x10   : > { %v5469_v32 = vsel %vm3948_vm4, 4294967295, %v5468_v32  ;;  %vm4271_vm7 = vmor %vm1211_vm5, %vm1212_vm6  ;;  %s5233_s19 = scalar_lea.vmem %s5424_s3, %s3306_s11 }
  0x11   : > { %s3903_s25 = scalar_lea.vmem %s5421_s0, %s3778_s22  ;;  %5470 = vst [vmem:[#allocation2_spill] sm:$0xff] %v5469_v32 }
  0x12   : > { %v3912_v6 = vld [vmem:[%s3903_s25] sm:$0xf]  ;;  %v3915_v7 = vld [vmem:[%s3903_s25 + $0x4] sm:$0xf]  ;;  %v3918_v8 = vld [vmem:[%s3903_s25 + $0x8] sm:$0x1] }
  0x13   : > { %v256_v9 = vshrl.u32 %v3912_v6, 16  ;;  %v259_v10 = vshll.u32 %v3912_v6, 16  ;;  %v265_v11 = vshll.u32 %v3915_v7, 16  ;;  %v269_v12 = vshrl.u32 %v3915_v7, 16  ;;  %v3925_v13 = vld [vmem:[%s3903_s25 + $0x60] sm:$0xf] }
  0x14   : > { %v275_v14 = vshll.u32 %v3918_v8, 16  ;;  %v3930_v16 = vld [vmem:[%s3903_s25 + $0x64] sm:$0xf]  ;;  %v3933_v17 = vld [vmem:[%s3903_s25 + $0x68] sm:$0x1]  ;;  %v448_v23 = vshrl.u32 %v3925_v13, 16 }
  0x15   : > { %v258_v18 = vrot.slane %v256_v9, 4  ;;  %v261_v19 = vrot.slane %v259_v10, 5  ;;  %v267_v20 = vrot.slane %v265_v11, 5  ;;  %v271_v21 = vrot.slane %v269_v12, 4  ;;  %v3941_v30 = vld [vmem:[%s3903_s25 + $0xc] sm:$0xf] }
  0x16   : > { %v277_v22 = vrot.slane %v275_v14, 5  ;;  %v451_v24 = vshll.u32 %v3925_v13, 16  ;;  %v457_v25 = vshll.u32 %v3930_v16, 16  ;;  %v461_v28 = vshrl.u32 %v3930_v16, 16  ;;  %v3944_v31 = vld [vmem:[%s3903_s25 + $0x10] sm:$0xf] }
  0x17   : > { %v262_v26 = vor.u32 %v261_v19, %v258_v18  ;;  %v272_v27 = vor.u32 %v271_v21, %v267_v20  ;;  %v467_v29 = vshll.u32 %v3933_v17, 16  ;;  %v450_v33 = vrot.slane %v448_v23, 4  ;;  %v3955_v42 = vld [vmem:[%s3903_s25 + $0x14] sm:$0x1]  ;;  %v3966_v54 = vld [vmem:[%s3903_s25 + $0x6c] sm:$0xf] }
  0x18   : > { %v453_v34 = vrot.slane %v451_v24, 5  ;;  %v459_v35 = vrot.slane %v457_v25, 5  ;;  %v463_v39 = vrot.slane %v461_v28, 4  ;;  %v280_v43 = vshrl.u32 %v3941_v30, 16  ;;  %5471 = vst [vmem:[#allocation3_spill] sm:$0xff] %v3966_v54 }
  0x19   : > { %v263_v37 = vrot.slane %v262_v26, 4  ;;  %v273_v38 = vrot.slane %v272_v27, 4  ;;  %v469_v40 = vrot.slane %v467_v29, 5  ;;  %v283_v44 = vshll.u32 %v3941_v30, 16  ;;  %v3970_v59 = vld [vmem:[%s3903_s25 + $0x70] sm:$0xf] }
  0x1a   : > { %v454_v41 = vor.u32 %v453_v34, %v450_v33  ;;  %v289_v45 = vshll.u32 %v3944_v31, 16  ;;  %v464_v48 = vor.u32 %v463_v39, %v459_v35  ;;  %v293_v49 = vshrl.u32 %v3944_v31, 16  ;;  %v3978_v0 = vld [vmem:[%s3903_s25 + $0x74] sm:$0x1]  ;;  %v3984_v10 = vld [vmem:[%s3903_s25 + $0x18] sm:$0xf] }
  0x1b   : > { %v268_v46 = vsel %vm3948_vm4, %v263_v37, %v267_v20  ;;  %v278_v47 = vsel %vm3948_vm4, %v273_v38, %v277_v22  ;;  %v282_v52 = vrot.slane %v280_v43, 4  ;;  %v285_v53 = vrot.slane %v283_v44, 5  ;;  %5472 = vst [vmem:[#allocation4_spill] sm:$0xff] %v3978_v0  ;;  %v3993_v23 = vld [vmem:[%s3903_s25 + $0x1c] sm:$0xf] }
  0x1c   : > { %v3080_v50 = vcombine.low %v268_v46, %v278_v47  ;;  %v455_v51 = vrot.slane %v454_v41, 4  ;;  %v465_v55 = vrot.slane %v464_v48, 4  ;;  %v291_v56 = vrot.slane %v289_v45, 5  ;;  %v4000_v27 = vld [vmem:[%s3903_s25 + $0x20] sm:$0x1] }
  0x1d   : > { %v295_v57 = vrot.slane %v293_v49, 4  ;;  %v299_v58 = vshll.u32 %v3955_v42, 16  ;;  %v286_v61 = vor.u32 %v285_v53, %v282_v52  ;;  %v472_v9 = vshrl.u32 %v3966_v54, 16  ;;  %v4007_v37 = vld [vmem:[%s3903_s25 + $0x78] sm:$0xf] }
  0x1e   : > { %3462 = vmatprep.mubr.msk.bf16.mxu0 %vm689_vm3, %v3080_v50  ;;  %v460_v60 = vsel %vm3948_vm4, %v455_v51, %v459_v35  ;;  %v470_v1 = vsel %vm3948_vm4, %v465_v55, %v469_v40  ;;  %v475_v14 = vshll.u32 %v3966_v54, 16  ;;  %v481_v18 = vshll.u32 %v3970_v59, 16  ;;  %5474 = vst [vmem:[#allocation6_spill] sm:$0xff] %v4007_v37  ;;  %v4015_v43 = vld [vmem:[%s5422_s1 + $0x8] sm:$0x3] }
  0x1f   : > { %v296_v2 = vor.u32 %v295_v57, %v291_v56  ;;  %v301_v3 = vrot.slane %v299_v58, 5  ;;  %v3986_v11 = vcombine.low %v460_v60, %v470_v1  ;;  %v287_v12 = vrot.slane %v286_v61, 4  ;;  %v4020_v48 = vld [vmem:[%s3903_s25 + $0x7c] sm:$0xf]  ;;  %v4028_v58 = vld [vmem:[%s3903_s25 + $0x80] sm:$0x1] }
  0x20   : > { %v474_v20 = vrot.slane %v472_v9, 4  ;;  %v485_v21 = vshrl.u32 %v3970_v59, 16  ;;  %v491_v22 = vshll.u32 %v3978_v0, 16  ;;  %v477_v25 = vrot.slane %v475_v14, 5  ;;  %5476 = vst [vmem:[#allocation8_spill] sm:$0xff] %v4020_v48  ;;  %5477 = vst [vmem:[#allocation9_spill] sm:$0xff] %v4028_v58 }
  0x21   : > { %5473 = vst [vmem:[#allocation5_spill] sm:$0xff] %v3986_v11  ;;  %v297_v19 = vrot.slane %v296_v2, 4  ;;  %3478 = vmatprep.mubr.msk.bf16.mxu1 %vm689_vm3, %v3986_v11  ;;  %v292_v24 = vsel %vm3948_vm4, %v287_v12, %v291_v56  ;;  %v483_v26 = vrot.slane %v481_v18, 5  ;;  %v304_v28 = vshrl.u32 %v3984_v10, 16  ;;  %v4042_v18 = vld [vmem:[%s3903_s25 + $0x28] sm:$0xf] }
  0x22   : > { %v487_v33 = vrot.slane %v485_v21, 4  ;;  %v493_v34 = vrot.slane %v491_v22, 5  ;;  %v307_v35 = vshll.u32 %v3984_v10, 16  ;;  %v478_v39 = vor.u32 %v477_v25, %v474_v20 }
  0x23   : > { %v302_v29 = vsel %vm3948_vm4, %v297_v19, %v301_v3  ;;  %v306_v40 = vrot.slane %v304_v28, 4  ;;  %v313_v41 = vshll.u32 %v3993_v23, 16  ;;  %v317_v46 = vshrl.u32 %v3993_v23, 16  ;;  %v4034_v3 = vld [vmem:[%s3903_s25 + $0x24] sm:$0xf] }
  0x24   : > { %v4009_v38 = vcombine.low %v292_v24, %v302_v29  ;;  %v488_v44 = vor.u32 %v487_v33, %v483_v26  ;;  %v309_v45 = vrot.slane %v307_v35, 5  ;;  %v323_v47 = vshll.u32 %v4000_v27, 16  ;;  %v4050_v24 = vld [vmem:[%s5422_s1 + $0x6] sm:$0x3]  ;;  %v4055_v29 = vld [vmem:[%s3903_s25 + $0x2c] sm:$0x1] }
  0x25   : > { %v479_v49 = vrot.slane %v478_v39, 4  ;;  %v315_v50 = vrot.slane %v313_v41, 5  ;;  %v496_v51 = vshrl.u32 %v4007_v37, 16  ;;  %v499_v52 = vshll.u32 %v4007_v37, 16  ;;  %v4063_v41 = vld [vmem:[%s3903_s25 + $0x84] sm:$0xf] }
  0x26   : > { %5475 = vst [vmem:[#allocation7_spill] sm:$0xff] %v4009_v38  ;;  %3463 = vmatmul.mubr.msk.bf16.vlgmr.msra.gmra.mxu0 %vm689_vm3, %v4009_v38  ;;  %v489_v53 = vrot.slane %v488_v44, 4  ;;  %v310_v55 = vor.u32 %v309_v45, %v306_v40  ;;  %v319_v56 = vrot.slane %v317_v46, 4  ;;  %v325_v57 = vrot.slane %v323_v47, 5  ;;  %v4210_v38 = vld [vmem:[%s3903_s25 + $0xb0] sm:$0x1] }
  0x27   : > { %3529 = vmatpush3.bf16.msra.mxu0 %v3909_v5  ;;  %v484_v60 = vsel %vm3948_vm4, %v479_v49, %v483_v26  ;;  %v498_v61 = vrot.slane %v496_v51, 4  ;;  %v501_v1 = vrot.slane %v499_v52, 5  ;;  %v505_v2 = vshll.u32 %v4020_v48, 16  ;;  %v4070_v49 = vld [vmem:[%s3903_s25 + $0x88] sm:$0xf]  ;;  %5489 = vst [vmem:[#allocation21_spill] sm:$0xff] %v4210_v38 }
  0x28   : > { %3773 = vmatprep.subr.msk.bf16.mxu0 %vm738_vm0, %v4015_v43  ;;  %v494_v5 = vsel %vm3948_vm4, %v489_v53, %v493_v34  ;;  %v311_v9 = vrot.slane %v310_v55, 4  ;;  %v320_v12 = vor.u32 %v319_v56, %v315_v50  ;;  %v509_v14 = vshrl.u32 %v4020_v48, 16  ;;  %v4232_v48 = vld [vmem:[%s3903_s25 + $0x5c] sm:$0x1] }
  0x29   : > { %v4044_v19 = vcombine.low %v484_v60, %v494_v5  ;;  %v502_v20 = vor.u32 %v501_v1, %v498_v61  ;;  %v507_v21 = vrot.slane %v505_v2, 5  ;;  %v515_v22 = vshll.u32 %v4028_v58, 16 }
  0x2a   : > { %v316_v25 = vsel %vm3948_vm4, %v311_v9, %v315_v50  ;;  %v321_v26 = vrot.slane %v320_v12, 4  ;;  %v511_v28 = vrot.slane %v509_v14, 4  ;;  %v328_v33 = vshrl.u32 %v4034_v3, 16  ;;  %v4089_v9 = vld [vmem:[%s3903_s25 + $0x30] sm:$0xf] }
  0x2b   : > { %5478 = vst [vmem:[#allocation10_spill] sm:$0xff] %v4044_v19  ;;  %3479 = vmatmul.mubr.msk.bf16.vlgmr.msra.gmra.mxu1 %vm689_vm3, %v4044_v19  ;;  %v503_v34 = vrot.slane %v502_v20, 4  ;;  %v517_v35 = vrot.slane %v515_v22, 5  ;;  %v331_v39 = vshll.u32 %v4034_v3, 16  ;;  %v337_v40 = vshll.u32 %v4042_v18, 16 }
  0x2c   : > { %3495 = vmatpush3.bf16.msra.mxu1 %v3906_v4  ;;  %v326_v44 = vsel %vm3948_vm4, %v321_v26, %v325_v57  ;;  %v512_v45 = vor.u32 %v511_v28, %v507_v21  ;;  %v330_v46 = vrot.slane %v328_v33, 4  ;;  %v341_v47 = vshrl.u32 %v4042_v18, 16  ;;  %v4080_v57 = vld [vmem:[%s3903_s25 + $0x8c] sm:$0x1]  ;;  %v4094_v22 = vld [vmem:[%s3903_s25 + $0x34] sm:$0xf] }
  0x2d   : > { %v4072_v50 = vcombine.low %v316_v25, %v326_v44  ;;  %v508_v51 = vsel %vm3948_vm4, %v503_v34, %v507_v21  ;;  %v333_v52 = vrot.slane %v331_v39, 5  ;;  %v339_v53 = vrot.slane %v337_v40, 5  ;;  %3772 = vmatprep.subr.msk.bf16.mxu1 %vm738_vm0, %v4050_v24 }
  0x2e   : > { %v513_v4 = vrot.slane %v512_v45, 4  ;;  %v343_v55 = vrot.slane %v341_v47, 4  ;;  %v347_v56 = vshll.u32 %v4055_v29, 16  ;;  %v520_v60 = vshrl.u32 %v4063_v41, 16 }
  0x2f   : > { %5479 = vst [vmem:[#allocation11_spill] sm:$0xff] %v4072_v50  ;;  %3466 = vmatprep.mubr.msk.bf16.mxu0 %vm689_vm3, %v4072_v50  ;;  %v334_v61 = vor.u32 %v333_v52, %v330_v46  ;;  %v523_v1 = vshll.u32 %v4063_v41, 16  ;;  %v529_v2 = vshll.u32 %v4070_v49, 16  ;;  %v533_v5 = vshrl.u32 %v4070_v49, 16  ;;  %v4105_v46 = vld [vmem:[%s3903_s25 + $0x38] sm:$0x1] }
  0x30   : > { %v518_v12 = vsel %vm3948_vm4, %v513_v4, %v517_v35  ;;  %v344_v14 = vor.u32 %v343_v55, %v339_v53  ;;  %v349_v20 = vrot.slane %v347_v56, 5  ;;  %v522_v21 = vrot.slane %v520_v60, 4  ;;  %v4110_v52 = vld [vmem:[%s3903_s25 + $0x90] sm:$0xf] }
  0x31   : > { %v4096_v25 = vcombine.low %v508_v51, %v518_v12  ;;  %v335_v26 = vrot.slane %v334_v61, 4  ;;  %v525_v28 = vrot.slane %v523_v1, 5  ;;  %v531_v33 = vrot.slane %v529_v2, 5  ;;  %v4115_v61 = vld [vmem:[%s3903_s25 + $0x94] sm:$0xf] }
  0x32   : > { %v345_v34 = vrot.slane %v344_v14, 4  ;;  %v535_v39 = vrot.slane %v533_v5, 4  ;;  %v539_v40 = vshll.u32 %v4080_v57, 16  ;;  %v352_v44 = vshrl.u32 %v4089_v9, 16 }
  0x33   : > { %5480 = vst [vmem:[#allocation12_spill] sm:$0xff] %v4096_v25  ;;  %3482 = vmatprep.mubr.msk.bf16.mxu1 %vm689_vm3, %v4096_v25  ;;  %v340_v35 = vsel %vm3948_vm4, %v335_v26, %v339_v53  ;;  %v526_v45 = vor.u32 %v525_v28, %v522_v21  ;;  %v355_v47 = vshll.u32 %v4089_v9, 16  ;;  %v361_v51 = vshll.u32 %v4094_v22, 16  ;;  %v4161_v25 = vld [vmem:[%s3903_s25 + $0xa0] sm:$0xf] }
  0x34   : > { %v350_v4 = vsel %vm3948_vm4, %v345_v34, %v349_v20  ;;  %v536_v55 = vor.u32 %v535_v39, %v531_v33  ;;  %v541_v56 = vrot.slane %v539_v40, 5  ;;  %v354_v60 = vrot.slane %v352_v44, 4  ;;  %v4127_v34 = vld [vmem:[%s3903_s25 + $0x98] sm:$0x1]  ;;  %v4132_v44 = vld [vmem:[%s3903_s25 + $0x3c] sm:$0xf] }
  0x35   : > { %v4117_v53 = vcombine.low %v340_v35, %v350_v4  ;;  %v527_v1 = vrot.slane %v526_v45, 4  ;;  %v357_v2 = vrot.slane %v355_v47, 5  ;;  %v363_v5 = vrot.slane %v361_v51, 5  ;;  %v4137_v4 = vld [vmem:[%s3903_s25 + $0x40] sm:$0xf] }
  0x36   : > { %v537_v12 = vrot.slane %v536_v55, 4  ;;  %v365_v14 = vshrl.u32 %v4094_v22, 16  ;;  %v371_v21 = vshll.u32 %v4105_v46, 16  ;;  %v544_v20 = vshrl.u32 %v4110_v52, 16 }
  0x37   : > { %5481 = vst [vmem:[#allocation13_spill] sm:$0xff] %v4117_v53  ;;  %3467 = vmatmul.mubr.msk.bf16.gmra.mxu0 %vm689_vm3, %v4117_v53  ;;  %v532_v26 = vsel %vm3948_vm4, %v527_v1, %v531_v33  ;;  %v358_v28 = vor.u32 %v357_v2, %v354_v60  ;;  %v547_v39 = vshll.u32 %v4110_v52, 16  ;;  %v553_v40 = vshll.u32 %v4115_v61, 16 }
  0x38   : > { %v542_v35 = vsel %vm3948_vm4, %v537_v12, %v541_v56  ;;  %v367_v45 = vrot.slane %v365_v14, 4  ;;  %v373_v47 = vrot.slane %v371_v21, 5  ;;  %v546_v51 = vrot.slane %v544_v20, 4  ;;  %v4149_v14 = vld [vmem:[%s3903_s25 + $0x44] sm:$0x1] }
  0x39   : > { %v4139_v33 = vcombine.low %v532_v26, %v542_v35  ;;  %v359_v55 = vrot.slane %v358_v28, 4  ;;  %v549_v60 = vrot.slane %v547_v39, 5  ;;  %v555_v1 = vrot.slane %v553_v40, 5  ;;  %v4154_v26 = vld [vmem:[%s3903_s25 + $0x9c] sm:$0xf] }
  0x3a   : > { %v368_v2 = vor.u32 %v367_v45, %v363_v5  ;;  %v557_v36 = vshrl.u32 %v4115_v61, 16  ;;  %v563_v63 = vshll.u32 %v4127_v34, 16  ;;  %v376_v15 = vshrl.u32 %v4132_v44, 16 }
  0x3b   : > { %5482 = vst [vmem:[#allocation14_spill] sm:$0xff] %v4139_v33  ;;  %3483 = vmatmul.mubr.msk.bf16.gmra.mxu1 %vm689_vm3, %v4139_v33  ;;  %v364_v56 = vsel %vm3948_vm4, %v359_v55, %v363_v5  ;;  %v550_v12 = vor.u32 %v549_v60, %v546_v51  ;;  %v379_v21 = vshll.u32 %v4132_v44, 16  ;;  %v385_v20 = vshll.u32 %v4137_v4, 16 }
  0x3c   : > { %v369_v28 = vrot.slane %v368_v2, 4  ;;  %v559_v39 = vrot.slane %v557_v36, 4  ;;  %v565_v40 = vrot.slane %v563_v63, 5  ;;  %v378_v35 = vrot.slane %v376_v15, 4 }
  0x3d   : > { %v551_v45 = vrot.slane %v550_v12, 4  ;;  %v381_v62 = vrot.slane %v379_v21, 5  ;;  %v387_v33 = vrot.slane %v385_v20, 5  ;;  %v389_v5 = vshrl.u32 %v4137_v4, 16  ;;  %v4169_v21 = vld [vmem:[%s3903_s25 + $0xa4] sm:$0x1] }
  0x3e   : > { %v374_v51 = vsel %vm3948_vm4, %v369_v28, %v373_v47  ;;  %v560_v55 = vor.u32 %v559_v39, %v555_v1  ;;  %v395_v60 = vshll.u32 %v4149_v14, 16  ;;  %v568_v2 = vshrl.u32 %v4154_v26, 16  ;;  %5484 = vst [vmem:[#allocation16_spill] sm:$0xff] %v4169_v21  ;;  %v4172_v20 = vld [vmem:[%s3903_s25 + $0x48] sm:$0xf] }
  0x3f   : > { %v4164_v36 = vcombine.low %v364_v56, %v374_v51  ;;  %v556_v15 = vsel %vm3948_vm4, %v551_v45, %v555_v1  ;;  %v382_v63 = vor.u32 %v381_v62, %v378_v35  ;;  %v391_v12 = vrot.slane %v389_v5, 4 }
  0x40   : > { %v561_v47 = vrot.slane %v560_v55, 4  ;;  %v397_v28 = vrot.slane %v395_v60, 5  ;;  %v570_v39 = vrot.slane %v568_v2, 4  ;;  %v571_v19 = vshll.u32 %v4154_v26, 16  ;;  %v4183_v55 = vld [vmem:[%s3903_s25 + $0x4c] sm:$0xf] }
  0x41   : > { %5483 = vst [vmem:[#allocation15_spill] sm:$0xff] %v4164_v36  ;;  %3470 = vmatprep.mubr.msk.bf16.mxu0 %vm689_vm3, %v4164_v36  ;;  %v383_v56 = vrot.slane %v382_v63, 4  ;;  %v392_v51 = vor.u32 %v391_v12, %v387_v33  ;;  %v577_v1 = vshll.u32 %v4161_v25, 16  ;;  %v581_v62 = vshrl.u32 %v4161_v25, 16  ;;  %v4191_v36 = vld [vmem:[%s3903_s25 + $0x50] sm:$0x1] }
  0x42   : > { %v566_v35 = vsel %vm3948_vm4, %v561_v47, %v565_v40  ;;  %v573_v45 = vrot.slane %v571_v19, 5  ;;  %v587_v5 = vshll.u32 %v4169_v21, 16  ;;  %v400_v60 = vshrl.u32 %v4172_v20, 16  ;;  %v4194_v47 = vld [vmem:[%s3903_s25 + $0xa8] sm:$0xf] }
  0x43   : > { %v4186_v2 = vcombine.low %v556_v15, %v566_v35  ;;  %v388_v63 = vsel %vm3948_vm4, %v383_v56, %v387_v33  ;;  %v393_v12 = vrot.slane %v392_v51, 4  ;;  %v579_v11 = vrot.slane %v577_v1, 5  ;;  %5486 = vst [vmem:[#allocation18_spill] sm:$0xff] %v4194_v47 }
  0x44   : > { %v574_v53 = vor.u32 %v573_v45, %v570_v39  ;;  %v583_v50 = vrot.slane %v581_v62, 4  ;;  %v589_v40 = vrot.slane %v587_v5, 5  ;;  %v402_v19 = vrot.slane %v400_v60, 4  ;;  %v4207_v45 = vld [vmem:[%s3903_s25 + $0xac] sm:$0xf] }
  0x45   : > { %5485 = vst [vmem:[#allocation17_spill] sm:$0xff] %v4186_v2  ;;  %3486 = vmatprep.mubr.msk.bf16.mxu1 %vm689_vm3, %v4186_v2  ;;  %v398_v15 = vsel %vm3948_vm4, %v393_v12, %v397_v28  ;;  %v403_v33 = vshll.u32 %v4172_v20, 16  ;;  %v409_v56 = vshll.u32 %v4183_v55, 16  ;;  %v413_v51 = vshrl.u32 %v4183_v55, 16  ;;  %5488 = vst [vmem:[#allocation20_spill] sm:$0xff] %v4207_v45 }
  0x46   : > { %v4203_v1 = vcombine.low %v388_v63, %v398_v15  ;;  %v575_v39 = vrot.slane %v574_v53, 4  ;;  %v584_v62 = vor.u32 %v583_v50, %v579_v11  ;;  %v419_v35 = vshll.u32 %v4191_v36, 16 }
  0x47   : > { %v405_v5 = vrot.slane %v403_v33, 5  ;;  %v411_v60 = vrot.slane %v409_v56, 5  ;;  %v415_v2 = vrot.slane %v413_v51, 4  ;;  %v592_v28 = vshrl.u32 %v4194_v47, 16  ;;  %v4220_v51 = vld [vmem:[%s3903_s25 + $0x54] sm:$0xf] }
  0x48   : > { %5487 = vst [vmem:[#allocation19_spill] sm:$0xff] %v4203_v1  ;;  %3471 = vmatmul.mubr.msk.bf16.gmra.mxu0 %vm689_vm3, %v4203_v1  ;;  %v580_v53 = vsel %vm3948_vm4, %v575_v39, %v579_v11  ;;  %v585_v50 = vrot.slane %v584_v62, 4  ;;  %v421_v63 = vrot.slane %v419_v35, 5  ;;  %v595_v12 = vshll.u32 %v4194_v47, 16  ;;  %v4227_v62 = vld [vmem:[%s3903_s25 + $0x58] sm:$0xf] }
  0x49   : > { %v406_v15 = vor.u32 %v405_v5, %v402_v19  ;;  %v416_v58 = vor.u32 %v415_v2, %v411_v60  ;;  %v594_v33 = vrot.slane %v592_v28, 4  ;;  %v601_v56 = vshll.u32 %v4207_v45, 16 }
  0x4a   : > { %v590_v1 = vsel %vm3948_vm4, %v585_v50, %v589_v40  ;;  %v597_v37 = vrot.slane %v595_v12, 5  ;;  %v605_v11 = vshrl.u32 %v4207_v45, 16  ;;  %v611_v39 = vshll.u32 %v4210_v38, 16 }
  0x4b   : > { %v4229_v2 = vcombine.low %v580_v53, %v590_v1  ;;  %v407_v19 = vrot.slane %v406_v15, 4  ;;  %v417_v35 = vrot.slane %v416_v58, 4  ;;  %v603_v5 = vrot.slane %v601_v56, 5 }
  0x4c   : > { %v598_v28 = vor.u32 %v597_v37, %v594_v33  ;;  %v607_v0 = vrot.slane %v605_v11, 4  ;;  %v613_v54 = vrot.slane %v611_v39, 5  ;;  %v424_v40 = vshrl.u32 %v4220_v51, 16  ;;  %v4244_v37 = vld [vmem:[%s3903_s25 + $0xb4] sm:$0xf] }
  0x4d   : > { %5490 = vst [vmem:[#allocation22_spill] sm:$0xff] %v4229_v2  ;;  %3487 = vmatmul.mubr.msk.bf16.gmra.mxu1 %vm689_vm3, %v4229_v2  ;;  %v412_v50 = vsel %vm3948_vm4, %v407_v19, %v411_v60  ;;  %v422_v1 = vsel %vm3948_vm4, %v417_v35, %v421_v63  ;;  %v427_v58 = vshll.u32 %v4220_v51, 16  ;;  %v433_v53 = vshll.u32 %v4227_v62, 16  ;;  %5491 = vst [vmem:[#allocation23_spill] sm:$0xff] %v4244_v37  ;;  %v4249_v11 = vld [vmem:[%s3903_s25 + $0xb8] sm:$0xf] }
  0x4e   : > { %v4246_v12 = vcombine.low %v412_v50, %v422_v1  ;;  %v599_v15 = vrot.slane %v598_v28, 4  ;;  %v608_v33 = vor.u32 %v607_v0, %v603_v5  ;;  %v426_v56 = vrot.slane %v424_v40, 4 }
  0x4f   : > { %v429_v39 = vrot.slane %v427_v58, 5  ;;  %v435_v2 = vrot.slane %v433_v53, 5  ;;  %v437_v60 = vshrl.u32 %v4227_v62, 16  ;;  %v443_v63 = vshll.u32 %v4232_v48, 16  ;;  %v4260_v58 = vld [vmem:[%s3903_s25 + $0xbc] sm:$0x1] }
  0x50   : > { %5492 = vst [vmem:[#allocation24_spill] sm:$0xff] %v4246_v12  ;;  %3474 = vmatprep.mubr.msk.bf16.mxu0 %vm689_vm3, %v4246_v12  ;;  %v604_v19 = vsel %vm3948_vm4, %v599_v15, %v603_v5  ;;  %v609_v35 = vrot.slane %v608_v33, 4  ;;  %v616_v28 = vshrl.u32 %v4244_v37, 16  ;;  %v619_v0 = vshll.u32 %v4244_v37, 16 }
  0x51   : > { %v430_v40 = vor.u32 %v429_v39, %v426_v56  ;;  %v439_v50 = vrot.slane %v437_v60, 4  ;;  %v445_v1 = vrot.slane %v443_v63, 5  ;;  %v625_v53 = vshll.u32 %v4249_v11, 16 }
  0x52   : > { %v614_v38 = vsel %vm3948_vm4, %v609_v35, %v613_v54  ;;  %v618_v47 = vrot.slane %v616_v28, 4  ;;  %v621_v12 = vrot.slane %v619_v0, 5  ;;  %v629_v45 = vshrl.u32 %v4249_v11, 16 }
  0x53   : > { %v4266_v5 = vcombine.low %v604_v19, %v614_v38  ;;  %v431_v15 = vrot.slane %v430_v40, 4  ;;  %v440_v33 = vor.u32 %v439_v50, %v435_v2  ;;  %v627_v21 = vrot.slane %v625_v53, 5 }
  0x54   : > { %v622_v37 = vor.u32 %v621_v12, %v618_v47  ;;  %v631_v56 = vrot.slane %v629_v45, 4  ;;  %v635_v39 = vshll.u32 %v4260_v58, 16  ;;  %v3144_v54 = vrot.slane %v3912_v6, 9 }
  0x55   : > { %3490 = vmatprep.mubr.msk.bf16.mxu1 %vm689_vm3, %v4266_v5  ;;  %v436_v38 = vsel %vm3948_vm4, %v431_v15, %v435_v2  ;;  %v441_v63 = vrot.slane %v440_v33, 4  ;;  %v1216_v47 = vrot.slane %v3915_v7, 5  ;;  %v4283_v45 = vcombine.low %v3941_v30, %v3944_v31 }
  0x56   : > { %v623_v12 = vrot.slane %v622_v37, 4  ;;  %v632_v19 = vor.u32 %v631_v56, %v627_v21  ;;  %v637_v35 = vrot.slane %v635_v39, 5  ;;  %v3145_v28 = vrot.slane %v3941_v30, 9 }
  0x57   : > { %v446_v0 = vsel %vm3948_vm4, %v441_v63, %v445_v1  ;;  %v1217_v40 = vsel %vm4271_vm7, %v3144_v54, %v1216_v47  ;;  %v1218_v50 = vrot.slane %v1216_v47, 4  ;;  %v5495_v2 = vrot.slane %v3944_v31, 5 }
  0x58   : > { %v4292_v15 = vcombine.low %v436_v38, %v446_v0  ;;  %v628_v33 = vsel %vm3948_vm4, %v623_v12, %v627_v21  ;;  %v633_v37 = vrot.slane %v632_v19, 4  ;;  %v5497_v1 = vrot.slane %v3918_v8, 5 }
  0x59   : > { %v1225_v53 = vrot.slane %v5495_v2, 4  ;;  %v5496_v56 = vmov %v5495_v2  ;;  %v5498_v54 = vrot.slane %v3955_v42, 5  ;;  %v4310_v63 = vcombine.low %v3984_v10, %v3993_v23 }
  0x5a   : > { %v1224_v30 = vsel %vm4271_vm7, %v3145_v28, %v5496_v56  ;;  %v1220_v39 = vsel %vm4271_vm7, %v1218_v50, %v5497_v1  ;;  %v3146_v21 = vrot.slane %v3984_v10, 9  ;;  %3475 = vmatmul.mubr.msk.bf16.gmra.mxu0 %vm689_vm3, %v4292_v15  ;;  %v638_v8 = vsel %vm3948_vm4, %v633_v37, %v637_v35 }
  0x5b   : > { %v1227_v38 = vsel %vm4271_vm7, %v1225_v53, %v5498_v54  ;;  %v3161_v31 = vcombine.low %v1217_v40, %v1220_v39  ;;  %v1230_v42 = vrot.slane %v3993_v23, 5  ;;  %v4320_v12 = vcombine.low %v628_v33, %v638_v8 }
  0x5c   : > { %v4317_v47 = vcombine.low %v1224_v30, %v1227_v38  ;;  %v1233_v19 = vrot.slane %v4000_v27, 5  ;;  %v1237_v0 = vrot.slane %v4042_v18, 5  ;;  %v3147_v35 = vrot.slane %v4034_v3, 9 }
  0x5d   : > { %5499 = vst [vmem:[#allocation25_spill] sm:$0xff] %v4320_v12  ;;  %3530 = vmatprep.mubr.msk.bf16.mxu0 %vm689_vm3, %v3161_v31  ;;  %v1231_v10 = vsel %vm4271_vm7, %v3146_v21, %v1230_v42  ;;  %v1232_v28 = vrot.slane %v1230_v42, 4  ;;  %3491 = vmatmul.mubr.msk.bf16.gmra.mxu1 %vm689_vm3, %v4320_v12  ;;  %v3148_v40 = vrot.slane %v4089_v9, 9  ;;  %v1244_v23 = vrot.slane %v4094_v22, 5 }
  0x5e   : > { %v5500_v27 = vcombine.low %v3912_v6, %v3915_v7  ;;  %v1239_v2 = vrot.slane %v1237_v0, 4  ;;  %v1240_v53 = vrot.slane %v4055_v29, 5  ;;  %v1247_v33 = vrot.slane %v4105_v46, 5  ;;  %v4355_v46 = vld [vmem:[%s5422_s1 + $0xc] sm:$0x3] }
  0x5f   : > { %v1234_v50 = vsel %vm4271_vm7, %v1232_v28, %v1233_v19  ;;  %v1246_v56 = vrot.slane %v1244_v23, 4  ;;  %v1859_v30 = vsel %vm738_vm0, %v4015_v43, 0  ;;  %v1251_v1 = vrot.slane %v4137_v4, 5  ;;  %v4372_v19 = vld [vmem:[%s5422_s1 + $0xa] sm:$0x3] }
  0x60   : > { %3496 = vmatprep.mubr.msk.bf16.mxu1 %vm689_vm3, %v5500_v27  ;;  %v4340_v37 = vcombine.low %v1231_v10, %v1234_v50  ;;  %v1631_v6 = vsel %vm738_vm0, %v4050_v24, 0  ;;  %v1238_v7 = vsel %vm4271_vm7, %v3147_v35, %v1237_v0  ;;  %v1245_v39 = vsel %vm4271_vm7, %v3148_v40, %v1244_v23 }
  0x61   : > { %v1258_v29 = vrot.slane %v4183_v55, 5  ;;  %v1241_v43 = vsel %vm4271_vm7, %v1239_v2, %v1240_v53  ;;  %v1248_v24 = vsel %vm4271_vm7, %v1246_v56, %v1247_v33  ;;  %v3149_v54 = vrot.slane %v4132_v44, 9 }
  0x62   : > { %3531 = vmatmul.mubr.msk.bf16.vlgmr.msra.gmra.mxu0 %vm689_vm3, %v4317_v47  ;;  %v1254_v38 = vrot.slane %v4149_v14, 5  ;;  %v1253_v21 = vrot.slane %v1251_v1, 4  ;;  %v3150_v8 = vrot.slane %v4172_v20, 9  ;;  %v1261_v42 = vrot.slane %v4191_v36, 5 }
  0x63   : > { %3597 = vmatpush3.bf16.msra.mxu0 %v1859_v30  ;;  %3534 = vmatprep.mubr.msk.bf16.mxu0 %vm689_vm3, %v4340_v37  ;;  %v1260_v31 = vrot.slane %v1258_v29, 4  ;;  %v4380_v14 = vcombine.low %v1238_v7, %v1241_v43  ;;  %v4382_v10 = vcombine.low %v1245_v39, %v1248_v24  ;;  %v1252_v36 = vsel %vm4271_vm7, %v3149_v54, %v1251_v1 }
  0x64   : > { %3775 = vmatprep.subr.msk.bf16.mxu0 %vm738_vm0, %v4355_v46  ;;  %v1255_v28 = vsel %vm4271_vm7, %v1253_v21, %v1254_v38  ;;  %v1259_v0 = vsel %vm4271_vm7, %v3150_v8, %v1258_v29  ;;  %v1265_v40 = vrot.slane %v4227_v62, 5  ;;  %v1275_v23 = vrot.slane %v3933_v17, 5  ;;  %v5501_v8 = vld [vmem:[#allocation16_spill] sm:$0xff] }
  0x65   : > { %3497 = vmatmul.mubr.msk.bf16.vlgmr.msra.gmra.mxu1 %vm689_vm3, %v4283_v45  ;;  %v1262_v35 = vsel %vm4271_vm7, %v1260_v31, %v1261_v42  ;;  %v3151_v27 = vrot.slane %v4220_v51, 9  ;;  %v3152_v50 = vrot.slane %v3925_v13, 9  ;;  %v1272_v2 = vrot.slane %v3930_v16, 5  ;;  %v5502_v42 = vld [vmem:[#allocation20_spill] sm:$0xff] }
  0x66   : > { %3563 = vmatpush3.bf16.msra.mxu1 %v1631_v6  ;;  %3500 = vmatprep.mubr.msk.bf16.mxu1 %vm689_vm3, %v4310_v63  ;;  %v4401_v53 = vcombine.low %v4034_v3, %v4042_v18  ;;  %v4405_v33 = vcombine.low %v4089_v9, %v4094_v22  ;;  %v4409_v56 = vcombine.low %v4132_v44, %v4137_v4  ;;  %v1268_v3 = vrot.slane %v4232_v48, 5 }
  0x67   : > { %3774 = vmatprep.subr.msk.bf16.mxu1 %vm738_vm0, %v4372_v19  ;;  %v4413_v17 = vcombine.low %v4172_v20, %v4183_v55  ;;  %v4417_v30 = vcombine.low %v1252_v36, %v1255_v28  ;;  %v4419_v1 = vcombine.low %v1259_v0, %v1262_v35  ;;  %v4424_v18 = vcombine.low %v4063_v41, %v4070_v49  ;;  %v5503_v36 = vld [vmem:[#allocation18_spill] sm:$0xff] }
  0x68   : > { %v1267_v9 = vrot.slane %v1265_v40, 4  ;;  %v3155_v22 = vrot.slane %v4063_v41, 9  ;;  %v1293_v44 = vrot.slane %v4070_v49, 5  ;;  %v1296_v4 = vrot.slane %v4080_v57, 5 }
  0x69   : > { %v1266_v20 = vsel %vm4271_vm7, %v3151_v27, %v1265_v40  ;;  %v1273_v48 = vsel %vm4271_vm7, %v3152_v50, %v1272_v2  ;;  %v1274_v55 = vrot.slane %v1272_v2, 4  ;;  %v4437_v6 = vcombine.low %v4110_v52, %v4115_v61  ;;  %v5504_v40 = vld [vmem:[#allocation21_spill] sm:$0xff] }
  0x6a   : > { %3535 = vmatmul.mubr.msk.bf16.gmra.mxu0 %vm689_vm3, %v4380_v14  ;;  %v1294_v41 = vsel %vm4271_vm7, %v3155_v22, %v1293_v44  ;;  %v1295_v49 = vrot.slane %v1293_v44, 4  ;;  %v3156_v57 = vrot.slane %v4110_v52, 9  ;;  %v1300_v7 = vrot.slane %v4115_v61, 5 }
  0x6b   : > { %3538 = vmatprep.mubr.msk.bf16.mxu0 %vm689_vm3, %v4382_v10  ;;  %v1279_v39 = vrot.slane %v3970_v59, 5  ;;  %v1303_v29 = vrot.slane %v4127_v34, 5  ;;  %v4451_v43 = vcombine.low %v4154_v26, %v4161_v25  ;;  %v3157_v24 = vrot.slane %v4154_v26, 9 }
  0x6c   : > { %v1269_v54 = vsel %vm4271_vm7, %v1267_v9, %v1268_v3  ;;  %v1297_v52 = vsel %vm4271_vm7, %v1295_v49, %v1296_v4  ;;  %v1301_v61 = vsel %vm4271_vm7, %v3156_v57, %v1300_v7  ;;  %v1302_v38 = vrot.slane %v1300_v7, 4  ;;  %v5505_v3 = vld [vmem:[#allocation23_spill] sm:$0xff]  ;;  %v5506_v57 = vld [vmem:[#allocation8_spill] sm:$0xff] }
  0x6d   : > { %3501 = vmatmul.mubr.msk.bf16.gmra.mxu1 %vm689_vm3, %v4401_v53  ;;  %v4460_v21 = vcombine.low %v1294_v41, %v1297_v52  ;;  %v1307_v34 = vrot.slane %v4161_v25, 5  ;;  %v1310_v31 = vrot.slane %v5501_v8, 5  ;;  %v4466_v28 = vcombine.low %v5503_v36, %v5502_v42 }
  0x6e   : > { %3504 = vmatprep.mubr.msk.bf16.mxu1 %vm689_vm3, %v4405_v33  ;;  %v1304_v26 = vsel %vm4271_vm7, %v1302_v38, %v1303_v29  ;;  %v3158_v0 = vrot.slane %v5503_v36, 9  ;;  %v1314_v35 = vrot.slane %v5502_v42, 5  ;;  %v1317_v27 = vrot.slane %v5504_v40, 5  ;;  %v5508_v42 = vld [vmem:[#allocation4_spill] sm:$0xff] }
  0x6f   : > { %v4475_v50 = vcombine.low %v1301_v61, %v1304_v26  ;;  %v1308_v25 = vsel %vm4271_vm7, %v3157_v24, %v1307_v34  ;;  %v1309_v2 = vrot.slane %v1307_v34, 4  ;;  %v4481_v9 = vcombine.low %v5505_v3, %v4249_v11 }
  0x70   : > { %v1315_v22 = vsel %vm4271_vm7, %v3158_v0, %v1314_v35  ;;  %v1316_v44 = vrot.slane %v1314_v35, 4  ;;  %v3159_v4 = vrot.slane %v5505_v3, 9  ;;  %v1321_v41 = vrot.slane %v4249_v11, 5  ;;  %v5509_v0 = vld [vmem:[#allocation6_spill] sm:$0xff] }
  0x71   : > { %v1276_v49 = vsel %vm4271_vm7, %v1274_v55, %v1275_v23  ;;  %v1286_v7 = vrot.slane %v5506_v57, 5  ;;  %v1311_v29 = vsel %vm4271_vm7, %v1309_v2, %v1310_v31  ;;  %v1324_v24 = vrot.slane %v4260_v58, 5  ;;  %v5507_v55 = vld [vmem:[#allocation3_spill] sm:$0xff] }
  0x72   : > { %3539 = vmatmul.mubr.msk.bf16.gmra.mxu0 %vm689_vm3, %v4417_v30  ;;  %v4497_v52 = vcombine.low %v1308_v25, %v1311_v29  ;;  %v1318_v61 = vsel %vm4271_vm7, %v1316_v44, %v1317_v27  ;;  %v1322_v11 = vsel %vm4271_vm7, %v3159_v4, %v1321_v41  ;;  %v1323_v38 = vrot.slane %v1321_v41, 4  ;;  %v5510_v27 = vld [vmem:[#allocation9_spill] sm:$0xff]  ;;  %v4584_v4 = vld [vmem:[%s3903_s25 + $0xc0] sm:$0xf]  ;;  %v247_v41 = vld [vmem:[%s3903_s25 + $0xc8] sm:$0x1] }
  0x73   : > { %3542 = vmatprep.mubr.msk.bf16.mxu0 %vm689_vm3, %v4419_v1  ;;  %v4505_v23 = vcombine.low %v1266_v20, %v1269_v54  ;;  %v3153_v34 = vrot.slane %v5507_v55, 9  ;;  %v4508_v58 = vcombine.low %v1315_v22, %v1318_v61  ;;  %v4510_v8 = vcombine.low %v1273_v48, %v1276_v49  ;;  %v5511_v61 = vld [vmem:[#allocation7_spill] sm:$0xff] }
  0x74   : > { %v1281_v31 = vrot.slane %v1279_v39, 4  ;;  %v1282_v36 = vrot.slane %v5508_v42, 5  ;;  %v1325_v26 = vsel %vm4271_vm7, %v1323_v38, %v1324_v24  ;;  %v3154_v35 = vrot.slane %v5509_v0, 9  ;;  %v5513_v42 = vld [vmem:[#allocation13_spill] sm:$0xff] }
  0x75   : > { %3505 = vmatmul.mubr.msk.bf16.gmra.mxu1 %vm689_vm3, %v4409_v56  ;;  %v1288_v40 = vrot.slane %v1286_v7, 4  ;;  %v1289_v25 = vrot.slane %v5510_v27, 5  ;;  %v4517_v2 = vcombine.low %v1322_v11, %v1325_v26  ;;  %v4521_v20 = vcombine.low %v4220_v51, %v4227_v62  ;;  %v5517_v26 = vld [vmem:[#allocation5_spill] sm:$0xff] }
  0x76   : > { %3508 = vmatprep.mubr.msk.bf16.mxu1 %vm689_vm3, %v4413_v17  ;;  %v4527_v48 = vcombine.low %v3925_v13, %v3930_v16  ;;  %v1280_v54 = vsel %vm4271_vm7, %v3153_v34, %v1279_v39  ;;  %v1283_v3 = vsel %vm4271_vm7, %v1281_v31, %v1282_v36  ;;  %v1287_v51 = vsel %vm4271_vm7, %v3154_v35, %v1286_v7  ;;  %v5512_v34 = vld [vmem:[#allocation11_spill] sm:$0xff]  ;;  %v5516_v36 = vld [vmem:[#allocation24_spill] sm:$0xff] }
  0x77   : > { %v1290_v62 = vsel %vm4271_vm7, %v1288_v40, %v1289_v25  ;;  %v4543_v13 = vcombine.low %v1280_v54, %v1283_v3  ;;  %v4549_v39 = vcombine.low %v5507_v55, %v3970_v59  ;;  %v4555_v22 = vcombine.low %v5509_v0, %v5506_v57  ;;  %v4578_v59 = vld [vmem:[%s3903_s25 + $0xc4] sm:$0xf]  ;;  %v3285_v55 = vld [vmem:[%s5422_s1 + $0x10] sm:$0x3] }
  0x78   : > { %v4545_v16 = vcombine.low %v1287_v51, %v1290_v62  ;;  %v2057_v44 = vrot.slane %v4578_v59, 5  ;;  %v3229_v49 = vrot.slane %v4584_v4, 9  ;;  %v2060_v7 = vrot.slane %v247_v41, 5  ;;  %v5518_v0 = vld [vmem:[#allocation10_spill] sm:$0xff]  ;;  %v5519_v35 = vld [vmem:[#allocation12_spill] sm:$0xff] }
  0x79   : > { %v2277_v38 = vsel %vm738_vm0, %v4355_v46, 0  ;;  %v2071_v31 = vsel %vm738_vm0, %v4372_v19, 0  ;;  %v5514_v46 = vld [vmem:[#allocation15_spill] sm:$0xff]  ;;  %v5520_v40 = vld [vmem:[#allocation14_spill] sm:$0xff]  ;;  %v1827_v27 = vshrl.u32 %v4584_v4, 16  ;;  %v1830_v25 = vshll.u32 %v4584_v4, 16 }
  0x7a   : > { %3543 = vmatmul.mubr.msk.bf16.gmra.mxu0 %vm689_vm3, %v4505_v23  ;;  %v2059_v57 = vrot.slane %v2057_v44, 4  ;;  %v2058_v29 = vsel %vm4271_vm7, %v3229_v49, %v2057_v44  ;;  %v5515_v19 = vld [vmem:[#allocation19_spill] sm:$0xff]  ;;  %v1840_v54 = vshrl.u32 %v4578_v59, 16  ;;  %v1836_v3 = vshll.u32 %v4578_v59, 16 }
  0x7b   : > { %3546 = vmatprep.mubr.msk.bf16.mxu0 %vm689_vm3, %v4510_v8  ;;  %v1829_v51 = vrot.slane %v1827_v27, 4  ;;  %v1832_v62 = vrot.slane %v1830_v25, 5 }
  0x7c   : > { %v2061_v24 = vsel %vm4271_vm7, %v2059_v57, %v2060_v7  ;;  %v1838_v44 = vrot.slane %v1836_v3, 5  ;;  %v1842_v49 = vrot.slane %v1840_v54, 4  ;;  %v5521_v57 = vld [vmem:[#allocation17_spill] sm:$0xff]  ;;  %v5522_v7 = vld [vmem:[#allocation22_spill] sm:$0xff]  ;;  %v3194_v3 = vcombine.low %v4584_v4, %v4578_v59 }
  0x7d   : > { %3509 = vmatmul.mubr.msk.bf16.gmra.mxu1 %vm689_vm3, %v4521_v20  ;;  %v4596_v11 = vcombine.low %v2058_v29, %v2061_v24  ;;  %v1833_v29 = vor.u32 %v1832_v62, %v1829_v51  ;;  %v2717_v51 = vsel %vm738_vm0, %v3285_v55, 0 }
  0x7e   : > { %3512 = vmatprep.mubr.msk.bf16.mxu1 %vm689_vm3, %v4527_v48  ;;  %v1843_v24 = vor.u32 %v1842_v49, %v1838_v44 }
  0x82   : > { %3547 = vmatmul.mubr.msk.bf16.gmra.mxu0 %vm689_vm3, %v4543_v13 }
  0x83   : > { %3550 = vmatprep.mubr.msk.bf16.mxu0 %vm689_vm3, %v4545_v16 }
  0x85   : > { %3513 = vmatmul.mubr.msk.bf16.gmra.mxu1 %vm689_vm3, %v4549_v39 }
  0x86   : > { %3516 = vmatprep.mubr.msk.bf16.mxu1 %vm689_vm3, %v4555_v22 }
  0x8a   : > { %3551 = vmatmul.mubr.msk.bf16.gmra.mxu0 %vm689_vm3, %v4460_v21 }
  0x8b   : > { %3554 = vmatprep.mubr.msk.bf16.mxu0 %vm689_vm3, %v4475_v50 }
  0x8d   : > { %3517 = vmatmul.mubr.msk.bf16.gmra.mxu1 %vm689_vm3, %v4424_v18 }
  0x8e   : > { %3520 = vmatprep.mubr.msk.bf16.mxu1 %vm689_vm3, %v4437_v6 }
  0x92   : > { %3555 = vmatmul.mubr.msk.bf16.gmra.mxu0 %vm689_vm3, %v4497_v52 }
  0x93   : > { %3558 = vmatprep.mubr.msk.bf16.mxu0 %vm689_vm3, %v4508_v58 }
  0x95   : > { %3521 = vmatmul.mubr.msk.bf16.gmra.mxu1 %vm689_vm3, %v4451_v43 }
  0x96   : > { %3524 = vmatprep.mubr.msk.bf16.mxu1 %vm689_vm3, %v4466_v28 }
  0x9a   : > { %3559 = vmatmul.mubr.msk.bf16.gmra.mxu0 %vm689_vm3, %v4517_v2 }
  0x9b   : > { %3598 = vmatprep.mubr.msk.bf16.mxu0 %vm689_vm3, %v5511_v61  ;;  %v1846_v61 = vshll.u32 %v247_v41, 16 }
  0x9d   : > { %3525 = vmatmul.mubr.msk.bf16.gmra.mxu1 %vm689_vm3, %v4481_v9  ;;  %v1848_v27 = vrot.slane %v1846_v61, 5  ;;  %v4788_v61 = vld [vmem:[%s3903_s25 + $0xd0] sm:$0xf] }
  0x9e   : > { %3564 = vmatprep.mubr.msk.bf16.mxu1 %vm689_vm3, %v4283_v45  ;;  %v3266_v45 = vld [vmem:[%s5422_s1 + $0xe] sm:$0x3] }
  0x9f   : > { %v2505_v62 = vsel %vm738_vm0, %v3266_v45, 0 }
  0xa2   : > { %3599 = vmatmul.mubr.msk.bf16.vlgmr.msra.gmra.mxu0 %vm689_vm3, %v5512_v34 }
  0xa3   : > { %3665 = vmatpush3.bf16.msra.mxu0 %v2277_v38  ;;  %3602 = vmatprep.mubr.msk.bf16.mxu0 %vm689_vm3, %v5513_v42  ;;  %v1834_v38 = vrot.slane %v1833_v29, 4 }
  0xa4   : > { %3777 = vmatprep.subr.msk.bf16.mxu0 %vm738_vm0, %v3285_v55 }
  0xa5   : > { %3565 = vmatmul.mubr.msk.bf16.vlgmr.msra.gmra.mxu1 %vm689_vm3, %v4310_v63  ;;  %v1839_v25 = vsel %vm3948_vm4, %v1834_v38, %v1838_v44 }
  0xa6   : > { %3631 = vmatpush3.bf16.msra.mxu1 %v2071_v31  ;;  %3568 = vmatprep.mubr.msk.bf16.mxu1 %vm689_vm3, %v4401_v53  ;;  %v1844_v31 = vrot.slane %v1843_v24, 4 }
  0xa7   : > { %3776 = vmatprep.subr.msk.bf16.mxu1 %vm738_vm0, %v3266_v45 }
  0xa8   : > { %v1849_v41 = vsel %vm3948_vm4, %v1844_v31, %v1848_v27 }
  0xa9   : > { %v4678_v54 = vcombine.low %v1839_v25, %v1849_v41 }
  0xaa   : > { %3603 = vmatmul.mubr.msk.bf16.gmra.mxu0 %vm689_vm3, %v5514_v46 }
  0xab   : > { %3606 = vmatprep.mubr.msk.bf16.mxu0 %vm689_vm3, %v5515_v19  ;;  %5523 = vst [vmem:[#allocation16_spill] sm:$0xff] %v4678_v54 }
  0xad   : > { %3569 = vmatmul.mubr.msk.bf16.gmra.mxu1 %vm689_vm3, %v4405_v33 }
  0xae   : > { %3572 = vmatprep.mubr.msk.bf16.mxu1 %vm689_vm3, %v4409_v56 }
  0xb2   : > { %3607 = vmatmul.mubr.msk.bf16.gmra.mxu0 %vm689_vm3, %v5516_v36 }
  0xb3   : > { %3610 = vmatprep.mubr.msk.bf16.mxu0 %vm689_vm3, %v4292_v15 }
  0xb5   : > { %3573 = vmatmul.mubr.msk.bf16.gmra.mxu1 %vm689_vm3, %v4413_v17 }
  0xb6   : > { %3576 = vmatprep.mubr.msk.bf16.mxu1 %vm689_vm3, %v4521_v20 }
  0xba   : > { %3611 = vmatmul.mubr.msk.bf16.gmra.mxu0 %vm689_vm3, %v5517_v26 }
  0xbb   : > { %3614 = vmatprep.mubr.msk.bf16.mxu0 %vm689_vm3, %v5518_v0 }
  0xbd   : > { %3577 = vmatmul.mubr.msk.bf16.gmra.mxu1 %vm689_vm3, %v4527_v48 }
  0xbe   : > { %3580 = vmatprep.mubr.msk.bf16.mxu1 %vm689_vm3, %v4549_v39 }
  0xc2   : > { %3615 = vmatmul.mubr.msk.bf16.gmra.mxu0 %vm689_vm3, %v5519_v35 }
  0xc3   : > { %3618 = vmatprep.mubr.msk.bf16.mxu0 %vm689_vm3, %v5520_v40 }
  0xc5   : > { %3581 = vmatmul.mubr.msk.bf16.gmra.mxu1 %vm689_vm3, %v4555_v22 }
  0xc6   : > { %3584 = vmatprep.mubr.msk.bf16.mxu1 %vm689_vm3, %v4424_v18 }
  0xca   : > { %3619 = vmatmul.mubr.msk.bf16.gmra.mxu0 %vm689_vm3, %v5521_v57 }
  0xcb   : > { %3622 = vmatprep.mubr.msk.bf16.mxu0 %vm689_vm3, %v5522_v7 }
  0xcd   : > { %3585 = vmatmul.mubr.msk.bf16.gmra.mxu1 %vm689_vm3, %v4437_v6 }
  0xce   : > { %3588 = vmatprep.mubr.msk.bf16.mxu1 %vm689_vm3, %v4451_v43 }
  0xd2   : > { %3623 = vmatmul.mubr.msk.bf16.gmra.mxu0 %vm689_vm3, %v4266_v5 }
  0xd3   : > { %3626 = vmatprep.mubr.msk.bf16.mxu0 %vm689_vm3, %v4320_v12 }
  0xd5   : > { %3589 = vmatmul.mubr.msk.bf16.gmra.mxu1 %vm689_vm3, %v4466_v28 }
  0xd6   : > { %3592 = vmatprep.mubr.msk.bf16.mxu1 %vm689_vm3, %v4481_v9 }
  0xda   : > { %3627 = vmatmul.mubr.msk.bf16.gmra.mxu0 %vm689_vm3, %v4678_v54 }
  0xdb   : > { %3666 = vmatprep.mubr.msk.bf16.mxu0 %vm689_vm3, %v4310_v63 }
  0xdd   : > { %3593 = vmatmul.mubr.msk.bf16.gmra.mxu1 %vm689_vm3, %v3194_v3 }
  0xde   : > { %3632 = vmatprep.mubr.msk.bf16.mxu1 %vm689_vm3, %v4317_v47 }
  0xe2   : > { %3667 = vmatmul.mubr.msk.bf16.vlgmr.msra.gmra.mxu0 %vm689_vm3, %v4401_v53 }
  0xe3   : > { %3733 = vmatpush3.bf16.msra.mxu0 %v2717_v51  ;;  %3670 = vmatprep.mubr.msk.bf16.mxu0 %vm689_vm3, %v4405_v33 }
  0xe5   : > { %3633 = vmatmul.mubr.msk.bf16.vlgmr.msra.gmra.mxu1 %vm689_vm3, %v4340_v37 }
  0xe6   : > { %3699 = vmatpush3.bf16.msra.mxu1 %v2505_v62  ;;  %3636 = vmatprep.mubr.msk.bf16.mxu1 %vm689_vm3, %v4380_v14  ;;  %v4701_v63 = vpop.f32.mrf.mxu0 }
  0xe8   : > { %v4711_v53 = vpop.f32.mrf.mxu0 }
  0xea   : > { %3671 = vmatmul.mubr.msk.bf16.gmra.mxu0 %vm689_vm3, %v4409_v56  ;;  %v4717_v56 = vpop.f32.mrf.mxu0 }
  0xeb   : > { %3674 = vmatprep.mubr.msk.bf16.mxu0 %vm689_vm3, %v4413_v17  ;;  %v4707_v47 = vpop.f32.mrf.mxu1 }
  0xec   : > { %v4727_v59 = vpop.f32.mrf.mxu0 }
  0xed   : > { %3637 = vmatmul.mubr.msk.bf16.gmra.mxu1 %vm689_vm3, %v4382_v10  ;;  %v4713_v33 = vpop.f32.mrf.mxu1 }
  0xee   : > { %3640 = vmatprep.mubr.msk.bf16.mxu1 %vm689_vm3, %v4417_v30 }
  0xef   : > { %v4723_v17 = vpop.f32.mrf.mxu1 }
  0xf1   : > { %v4729_v4 = vpop.f32.mrf.mxu1 }
  0xf2   : > { %3675 = vmatmul.mubr.msk.bf16.gmra.mxu0 %vm689_vm3, %v4521_v20 }
  0xf3   : > { %3678 = vmatprep.mubr.msk.bf16.mxu0 %vm689_vm3, %v4527_v48 }
  0xf5   : > { %3641 = vmatmul.mubr.msk.bf16.gmra.mxu1 %vm689_vm3, %v4419_v1 }
  0xf6   : > { %3644 = vmatprep.mubr.msk.bf16.mxu1 %vm689_vm3, %v4505_v23 }
  0xf7   : > { %v4733_v20 = vpop.f32.mrf.mxu0 }
  0xf9   : > { %v4743_v55 = vpop.f32.mrf.mxu0 }
  0xfa   : > { %3679 = vmatmul.mubr.msk.bf16.gmra.mxu0 %vm689_vm3, %v4549_v39 }
  0xfb   : > { %3682 = vmatprep.mubr.msk.bf16.mxu0 %vm689_vm3, %v4555_v22  ;;  %v4739_v48 = vpop.f32.mrf.mxu1  ;;  %v4749_v39 = vpop.f32.mrf.mxu0 }
  0xfd   : > { %3645 = vmatmul.mubr.msk.bf16.gmra.mxu1 %vm689_vm3, %v4510_v8  ;;  %v4745_v45 = vpop.f32.mrf.mxu1  ;;  %v4759_v44 = vpop.f32.mrf.mxu0 }
  0xfe   : > { %3648 = vmatprep.mubr.msk.bf16.mxu1 %vm689_vm3, %v4543_v13 }
  0xff   : > { %v4755_v22 = vpop.f32.mrf.mxu1 }
 0x101   : > { %v4761_v49 = vpop.f32.mrf.mxu1 }
 0x102   : > { %3683 = vmatmul.mubr.msk.bf16.gmra.mxu0 %vm689_vm3, %v4424_v18 }
 0x103   : > { %3686 = vmatprep.mubr.msk.bf16.mxu0 %vm689_vm3, %v4437_v6 }
 0x105   : > { %3649 = vmatmul.mubr.msk.bf16.gmra.mxu1 %vm689_vm3, %v4545_v16 }
 0x106   : > { %3652 = vmatprep.mubr.msk.bf16.mxu1 %vm689_vm3, %v4460_v21 }
 0x108   : > { %v4765_v18 = vpop.f32.mrf.mxu0 }
 0x10a   : > { %3687 = vmatmul.mubr.msk.bf16.gmra.mxu0 %vm689_vm3, %v4451_v43  ;;  %v4775_v29 = vpop.f32.mrf.mxu0 }
 0x10b   : > { %3690 = vmatprep.mubr.msk.bf16.mxu0 %vm689_vm3, %v4466_v28  ;;  %v4785_v28 = vld [vmem:[%s3903_s25 + $0xcc] sm:$0xf] }
 0x10c   : > { %v4781_v43 = vpop.f32.mrf.mxu0 }
 0x10d   : > { %3653 = vmatmul.mubr.msk.bf16.gmra.mxu1 %vm689_vm3, %v4475_v50  ;;  %v4771_v6 = vpop.f32.mrf.mxu1 }
 0x10e   : > { %5524 = vst [vmem:[#allocation20_spill] sm:$0xff] %v4771_v6  ;;  %3656 = vmatprep.mubr.msk.bf16.mxu1 %vm689_vm3, %v4497_v52  ;;  %v4794_v31 = vpop.f32.mrf.mxu0 }
 0x10f   : > { %v4777_v24 = vpop.f32.mrf.mxu1 }
 0x110   : > { %5525 = vst [vmem:[#allocation18_spill] sm:$0xff] %v4777_v24 }
 0x111   : > { %v4792_v38 = vpop.f32.mrf.mxu1 }
 0x112   : > { %3691 = vmatmul.mubr.msk.bf16.gmra.mxu0 %vm689_vm3, %v4481_v9  ;;  %5526 = vst [vmem:[#allocation21_spill] sm:$0xff] %v4792_v38  ;;  %v3249_v9 = vcombine.low %v4785_v28, %v4788_v61 }
 0x113   : > { %3694 = vmatprep.mubr.msk.bf16.mxu0 %vm689_vm3, %v3194_v3  ;;  %v4800_v27 = vpop.f32.mrf.mxu1 }
 0x114   : > { %5527 = vst [vmem:[#allocation23_spill] sm:$0xff] %v4800_v27 }
 0x115   : > { %3657 = vmatmul.mubr.msk.bf16.gmra.mxu1 %vm689_vm3, %v4508_v58 }
 0x116   : > { %3660 = vmatprep.mubr.msk.bf16.mxu1 %vm689_vm3, %v4517_v2 }
 0x11a   : > { %v4802_v25 = vpop.f32.mrf.mxu0  ;;  %3695 = vmatmul.mubr.msk.bf16.gmra.mxu0 %vm689_vm3, %v3249_v9 }
 0x11b   : > { %3734 = vmatprep.mubr.msk.bf16.mxu0 %vm689_vm3, %v4340_v37 }
 0x11c   : > { %v4807_v41 = vpop.f32.mrf.mxu0 }
 0x11d   : > { %v4809_v3 = vpop.f32.mrf.mxu1  ;;  %3661 = vmatmul.mubr.msk.bf16.gmra.mxu1 %vm689_vm3, %v4596_v11 }
 0x11e   : > { %5528 = vst [vmem:[#allocation8_spill] sm:$0xff] %v4809_v3  ;;  %v4813_v51 = vpop.f32.mrf.mxu0  ;;  %3700 = vmatprep.mubr.msk.bf16.mxu1 %vm689_vm3, %v5512_v34 }
 0x11f   : > { %v4817_v62 = vpop.f32.mrf.mxu1 }
 0x120   : > { %5529 = vst [vmem:[#allocation3_spill] sm:$0xff] %v4817_v62  ;;  %v4819_v27 = vpop.f32.mrf.mxu0 }
 0x121   : > { %v4821_v9 = vpop.f32.mrf.mxu1 }
 0x122   : > { %5530 = vst [vmem:[#allocation4_spill] sm:$0xff] %v4821_v9  ;;  %v3532_v38 = vpop.f32.mrf.mxu0  ;;  %3735 = vmatmul.mubr.msk.bf16.vlgmr.msra.gmra.mxu0 %vm689_vm3, %v4380_v14 }
 0x123   : > { %v4825_v37 = vpop.f32.mrf.mxu1  ;;  %3738 = vmatprep.mubr.msk.bf16.mxu0 %vm689_vm3, %v4382_v10 }
 0x124   : > { %5531 = vst [vmem:[#allocation6_spill] sm:$0xff] %v4825_v37  ;;  %v1461_v3 = vpop.f32.mrf.mxu0 }
 0x125   : > { %v3498_v24 = vpop.f32.mrf.mxu1  ;;  %3701 = vmatmul.mubr.msk.bf16.vlgmr.msra.gmra.mxu1 %vm689_vm3, %v5513_v42 }
 0x126   : > { %v1077_v34 = vadd.f32 %v3498_v24, %v4701_v63  ;;  %v3533_v62 = vpop.f32.mrf.mxu0  ;;  %3704 = vmatprep.mubr.msk.bf16.mxu1 %vm689_vm3, %v5514_v46 }
 0x127   : > { %v1068_v9 = vpop.f32.mrf.mxu1 }
 0x128   : > { %v4834_v54 = vadd.f32 %v3532_v38, %v1077_v34  ;;  %v1069_v14 = vadd.f32 %v1068_v9, %v4711_v53  ;;  %v1464_v37 = vpop.f32.mrf.mxu0 }
 0x129   : > { %v3499_v6 = vpop.f32.mrf.mxu1 }
 0x12a   : > { %v4837_v32 = vadd.f32 %v1461_v3, %v1069_v14  ;;  %v1080_v10 = vadd.f32 %v3499_v6, %v4717_v56  ;;  %v3536_v12 = vpop.f32.mrf.mxu0  ;;  %3739 = vmatmul.mubr.msk.bf16.gmra.mxu0 %vm689_vm3, %v4417_v30 }
 0x12b   : > { %v1071_v42 = vpop.f32.mrf.mxu1  ;;  %3742 = vmatprep.mubr.msk.bf16.mxu0 %vm689_vm3, %v4419_v1 }
 0x12c   : > { %v4844_v46 = vadd.f32 %v3533_v62, %v1080_v10  ;;  %v1072_v63 = vadd.f32 %v1071_v42, %v4727_v59  ;;  %v1477_v24 = vpop.f32.mrf.mxu0 }
 0x12d   : > { %v3502_v53 = vpop.f32.mrf.mxu1  ;;  %3705 = vmatmul.mubr.msk.bf16.gmra.mxu1 %vm689_vm3, %v5515_v19 }
 0x12e   : > { %v4849_v38 = vadd.f32 %v1464_v37, %v1072_v63  ;;  %v1093_v56 = vadd.f32 %v3502_v53, %v4733_v20  ;;  %v3537_v6 = vpop.f32.mrf.mxu0  ;;  %3708 = vmatprep.mubr.msk.bf16.mxu1 %vm689_vm3, %v5516_v36 }
 0x12f   : > { %v1084_v30 = vpop.f32.mrf.mxu1 }
 0x130   : > { %v4854_v3 = vadd.f32 %v3536_v12, %v1093_v56  ;;  %v1085_v1 = vadd.f32 %v1084_v30, %v4743_v55  ;;  %v1480_v62 = vpop.f32.mrf.mxu0 }
 0x131   : > { %v3503_v59 = vpop.f32.mrf.mxu1 }
 0x132   : > { %v4857_v9 = vadd.f32 %v1477_v24, %v1085_v1  ;;  %v1096_v34 = vadd.f32 %v3503_v59, %v4749_v39  ;;  %v3540_v19 = vpop.f32.mrf.mxu0  ;;  %3743 = vmatmul.mubr.msk.bf16.gmra.mxu0 %vm689_vm3, %v4505_v23 }
 0x133   : > { %v1087_v20 = vpop.f32.mrf.mxu1  ;;  %3746 = vmatprep.mubr.msk.bf16.mxu0 %vm689_vm3, %v4510_v8 }
 0x134   : > { %v4864_v36 = vadd.f32 %v3537_v6, %v1096_v34  ;;  %v1088_v12 = vadd.f32 %v1087_v20, %v4759_v44  ;;  %v1493_v37 = vpop.f32.mrf.mxu0 }
 0x135   : > { %v3506_v55 = vpop.f32.mrf.mxu1  ;;  %3709 = vmatmul.mubr.msk.bf16.gmra.mxu1 %vm689_vm3, %v4292_v15 }
 0x136   : > { %v4869_v14 = vadd.f32 %v1480_v62, %v1088_v12  ;;  %v1109_v39 = vadd.f32 %v3506_v55, %v4765_v18  ;;  %v3541_v10 = vpop.f32.mrf.mxu0  ;;  %3712 = vmatprep.mubr.msk.bf16.mxu1 %vm689_vm3, %v5517_v26 }
 0x137   : > { %v1100_v23 = vpop.f32.mrf.mxu1 }
 0x138   : > { %v4874_v42 = vadd.f32 %v3540_v19, %v1109_v39  ;;  %v1101_v8 = vadd.f32 %v1100_v23, %v4775_v29  ;;  %v1496_v63 = vpop.f32.mrf.mxu0 }
 0x139   : > { %v3507_v44 = vpop.f32.mrf.mxu1 }
 0x13a   : > { %v4877_v24 = vadd.f32 %v1493_v37, %v1101_v8  ;;  %v1112_v53 = vadd.f32 %v3507_v44, %v4781_v43  ;;  %v3544_v15 = vpop.f32.mrf.mxu0  ;;  %3747 = vmatmul.mubr.msk.bf16.gmra.mxu0 %vm689_vm3, %v4543_v13  ;;  %v2476_v37 = vshll.u32 %v4785_v28, 16 }
 0x13b   : > { %v1103_v18 = vpop.f32.mrf.mxu1  ;;  %3750 = vmatprep.mubr.msk.bf16.mxu0 %vm689_vm3, %v4545_v16 }
 0x13c   : > { %v4884_v26 = vadd.f32 %v3541_v10, %v1112_v53  ;;  %v1104_v56 = vadd.f32 %v1103_v18, %v4794_v31  ;;  %v1509_v6 = vpop.f32.mrf.mxu0  ;;  %v2478_v44 = vrot.slane %v2476_v37, 5 }
 0x13d   : > { %v3510_v29 = vpop.f32.mrf.mxu1  ;;  %3713 = vmatmul.mubr.msk.bf16.gmra.mxu1 %vm689_vm3, %v5518_v0 }
 0x13e   : > { %v4889_v30 = vadd.f32 %v1496_v63, %v1104_v56  ;;  %v1125_v43 = vadd.f32 %v3510_v29, %v4802_v25  ;;  %v3545_v1 = vpop.f32.mrf.mxu0  ;;  %3716 = vmatprep.mubr.msk.bf16.mxu1 %vm689_vm3, %v5519_v35 }
 0x13f   : > { %v1116_v13 = vpop.f32.mrf.mxu1 }
 0x140   : > { %v4894_v62 = vadd.f32 %v3544_v15, %v1125_v43  ;;  %v1117_v16 = vadd.f32 %v1116_v13, %v4807_v41  ;;  %v1512_v59 = vpop.f32.mrf.mxu0  ;;  %v2473_v41 = vshrl.u32 %v4785_v28, 16 }
 0x141   : > { %v3511_v31 = vpop.f32.mrf.mxu1 }
 0x142   : > { %v4897_v34 = vadd.f32 %v1509_v6, %v1117_v16  ;;  %v1128_v19 = vadd.f32 %v3511_v31, %v4813_v51  ;;  %v3548_v0 = vpop.f32.mrf.mxu0  ;;  %3751 = vmatmul.mubr.msk.bf16.gmra.mxu0 %vm689_vm3, %v4460_v21  ;;  %v2482_v51 = vshll.u32 %v4788_v61, 16  ;;  %v2486_v21 = vshrl.u32 %v4788_v61, 16 }
 0x143   : > { %v1119_v25 = vpop.f32.mrf.mxu1  ;;  %3754 = vmatprep.mubr.msk.bf16.mxu0 %vm689_vm3, %v4475_v50 }
 0x144   : > { %v4904_v35 = vadd.f32 %v3545_v1, %v1128_v19  ;;  %v1120_v20 = vadd.f32 %v1119_v25, %v4819_v27  ;;  %v1525_v12 = vpop.f32.mrf.mxu0  ;;  %v2484_v15 = vrot.slane %v2482_v51, 5  ;;  %v2488_v18 = vrot.slane %v2486_v21, 4 }
 0x145   : > { %v3514_v55 = vpop.f32.mrf.mxu1  ;;  %3717 = vmatmul.mubr.msk.bf16.gmra.mxu1 %vm689_vm3, %v5520_v40  ;;  %v2475_v40 = vrot.slane %v2473_v41, 4  ;;  %v3284_v19 = vrot.slane %v4785_v28, 9 }
 0x146   : > { %v4913_v39 = vadd.f32 %v1512_v59, %v1120_v20  ;;  %v1141_v50 = vadd.f32 %v3514_v55, %v4707_v47  ;;  %v3549_v10 = vpop.f32.mrf.mxu0  ;;  %3720 = vmatprep.mubr.msk.bf16.mxu1 %vm689_vm3, %v5521_v57  ;;  %v2703_v57 = vrot.slane %v4788_v61, 5 }
 0x147   : > { %v1132_v27 = vpop.f32.mrf.mxu1 }
 0x148   : > { %v4918_v23 = vadd.f32 %v3548_v0, %v1141_v50  ;;  %v1133_v8 = vadd.f32 %v1132_v27, %v4713_v33  ;;  %v1528_v63 = vpop.f32.mrf.mxu0  ;;  %v250_v33 = vld [vmem:[%s3903_s25 + $0xd4] sm:$0x1] }
 0x149   : > { %v3515_v53 = vpop.f32.mrf.mxu1  ;;  %v2492_v31 = vshll.u32 %v250_v33, 16  ;;  %v2706_v25 = vrot.slane %v250_v33, 5 }
 0x14a   : > { %v4921_v56 = vadd.f32 %v1525_v12, %v1133_v8  ;;  %v1144_v47 = vadd.f32 %v3515_v53, %v4723_v17  ;;  %v3552_v6 = vpop.f32.mrf.mxu0  ;;  %3755 = vmatmul.mubr.msk.bf16.gmra.mxu0 %vm689_vm3, %v4497_v52  ;;  %v2479_v17 = vor.u32 %v2478_v44, %v2475_v40 }
 0x14b   : > { %v1135_v29 = vpop.f32.mrf.mxu1  ;;  %3758 = vmatprep.mubr.msk.bf16.mxu0 %vm689_vm3, %v4508_v58  ;;  %v2489_v58 = vor.u32 %v2488_v18, %v2484_v15  ;;  %v2494_v28 = vrot.slane %v2492_v31, 5 }
 0x14c   : > { %v4930_v43 = vadd.f32 %v3549_v10, %v1144_v47  ;;  %v1136_v1 = vadd.f32 %v1135_v29, %v4729_v4  ;;  %v1541_v13 = vpop.f32.mrf.mxu0  ;;  %v2705_v4 = vrot.slane %v2703_v57, 4  ;;  %v2480_v37 = vrot.slane %v2479_v17, 4  ;;  %v5535_v47 = vld [vmem:[#allocation16_spill] sm:$0xff]  ;;  %v5536_v29 = vld [vmem:[#allocation18_spill] sm:$0xff]  ;;  %v5537_v17 = vld [vmem:[#allocation21_spill] sm:$0xff] }
 0x14d   : > { %v3518_v16 = vpop.f32.mrf.mxu1  ;;  %3721 = vmatmul.mubr.msk.bf16.gmra.mxu1 %vm689_vm3, %v5522_v7 }
 0x14e   : > { %v4935_v59 = vadd.f32 %v1528_v63, %v1136_v1  ;;  %v1157_v52 = vadd.f32 %v3518_v16, %v4739_v48  ;;  %v3553_v61 = vpop.f32.mrf.mxu0  ;;  %3724 = vmatprep.mubr.msk.bf16.mxu1 %vm689_vm3, %v4266_v5  ;;  %v2490_v5 = vrot.slane %v2489_v58, 4  ;;  %v2707_v50 = vsel %vm4271_vm7, %v2705_v4, %v2706_v25  ;;  %v5532_v63 = vld [vmem:[#allocation25_spill] sm:$0xff] }
 0x14f   : > { %v1148_v0 = vpop.f32.mrf.mxu1  ;;  %v2485_v40 = vsel %vm3948_vm4, %v2480_v37, %v2484_v15 }
 0x150   : > { %v4941_v20 = vadd.f32 %v3552_v6, %v1157_v52  ;;  %v1149_v7 = vadd.f32 %v1148_v0, %v4745_v45  ;;  %v1544_v12 = vpop.f32.mrf.mxu0  ;;  %v2704_v45 = vsel %vm4271_vm7, %v3284_v19, %v2703_v57  ;;  %v2495_v60 = vsel %vm3948_vm4, %v2490_v5, %v2494_v28  ;;  %v5538_v19 = vld [vmem:[#allocation23_spill] sm:$0xff] }
 0x151   : > { %v3519_v41 = vpop.f32.mrf.mxu1  ;;  %v3267_v15 = vcombine.low %v2485_v40, %v2495_v60  ;;  %v5540_v5 = vld [vmem:[#allocation3_spill] sm:$0xff]  ;;  %v5542_v40 = vld [vmem:[#allocation6_spill] sm:$0xff] }
 0x152   : > { %v4944_v55 = vadd.f32 %v1541_v13, %v1149_v7  ;;  %v1160_v48 = vadd.f32 %v3519_v41, %v4755_v22  ;;  %v3556_v51 = vpop.f32.mrf.mxu0  ;;  %3759 = vmatmul.mubr.msk.bf16.gmra.mxu0 %vm689_vm3, %v4517_v2 }
 0x153   : > { %v1151_v21 = vpop.f32.mrf.mxu1  ;;  %3762 = vmatprep.mubr.msk.bf16.mxu0 %vm689_vm3, %v4596_v11  ;;  %v5534_v11 = vld [vmem:[#allocation20_spill] sm:$0xff] }
 0x154   : > { %v4955_v10 = vadd.f32 %v3553_v61, %v1160_v48  ;;  %v1152_v22 = vadd.f32 %v1151_v21, %v4761_v49  ;;  %v1557_v27 = vpop.f32.mrf.mxu0  ;;  %v3286_v49 = vcombine.low %v2704_v45, %v2707_v50 }
 0x155   : > { %v3522_v8 = vpop.f32.mrf.mxu1  ;;  %3725 = vmatmul.mubr.msk.bf16.gmra.mxu1 %vm689_vm3, %v5532_v63 }
 0x156   : > { %v4962_v44 = vadd.f32 %v1544_v12, %v1152_v22  ;;  %v1173_v53 = vadd.f32 %v3522_v8, %v5534_v11  ;;  %v3557_v18 = vpop.f32.mrf.mxu0  ;;  %3728 = vmatprep.mubr.msk.bf16.mxu1 %vm689_vm3, %v5535_v47  ;;  %v5539_v12 = vld [vmem:[#allocation8_spill] sm:$0xff] }
 0x157   : > { %v1164_v6 = vpop.f32.mrf.mxu1  ;;  %v5541_v22 = vld [vmem:[#allocation4_spill] sm:$0xff] }
 0x158   : > { %v4969_v57 = vadd.f32 %v3556_v51, %v1173_v53  ;;  %v1165_v33 = vadd.f32 %v1164_v6, %v5536_v29  ;;  %v1560_v1 = vpop.f32.mrf.mxu0 }
 0x159   : > { %v3523_v13 = vpop.f32.mrf.mxu1 }
 0x15a   : > { %v4972_v16 = vadd.f32 %v1557_v27, %v1165_v33  ;;  %v1176_v52 = vadd.f32 %v3523_v13, %v5537_v17  ;;  %v3560_v61 = vpop.f32.mrf.mxu0  ;;  %3763 = vmatmul.mubr.msk.bf16.gmra.mxu0 %vm689_vm3, %v3286_v49 }
 0x15b   : > { %v1167_v58 = vpop.f32.mrf.mxu1 }
 0x15c   : > { %v4976_v31 = vadd.f32 %v3557_v18, %v1176_v52  ;;  %v1168_v0 = vadd.f32 %v1167_v58, %v5538_v19  ;;  %v1573_v4 = vpop.f32.mrf.mxu0 }
 0x15d   : > { %v3526_v25 = vpop.f32.mrf.mxu1  ;;  %3729 = vmatmul.mubr.msk.bf16.gmra.mxu1 %vm689_vm3, %v3267_v15 }
 0x15e   : > { %v4980_v7 = vadd.f32 %v1560_v1, %v1168_v0  ;;  %v1189_v41 = vadd.f32 %v3526_v25, %v5539_v12  ;;  %v3561_v37 = vpop.f32.mrf.mxu0 }
 0x15f   : > { %v1180_v48 = vpop.f32.mrf.mxu1 }
 0x160   : > { %v4983_v51 = vadd.f32 %v3560_v61, %v1189_v41  ;;  %v1181_v28 = vadd.f32 %v1180_v48, %v5540_v5  ;;  %v1576_v21 = vpop.f32.mrf.mxu0 }
 0x161   : > { %v3527_v45 = vpop.f32.mrf.mxu1 }
 0x162   : > { %v4986_v50 = vadd.f32 %v1573_v4, %v1181_v28  ;;  %v1192_v27 = vadd.f32 %v3527_v45, %v5541_v22  ;;  %v3600_v8 = vpop.f32.mrf.mxu0 }
 0x163   : > { %v1183_v63 = vpop.f32.mrf.mxu1 }
 0x164   : > { %v4989_v2 = vadd.f32 %v3561_v37, %v1192_v27  ;;  %v1184_v11 = vadd.f32 %v1183_v63, %v5542_v40  ;;  %v1895_v53 = vpop.f32.mrf.mxu0 }
 0x165   : > { %v3566_v18 = vpop.f32.mrf.mxu1 }
 0x166   : > { %v4992_v47 = vadd.f32 %v1576_v21, %v1184_v11  ;;  %v1796_v60 = vadd.f32 %v3566_v18, %v4834_v54  ;;  %v3601_v49 = vpop.f32.mrf.mxu0 }
 0x167   : > { %v1667_v6 = vpop.f32.mrf.mxu1 }
 0x168   : > { %v4995_v29 = vadd.f32 %v3600_v8, %v1796_v60  ;;  %v1794_v33 = vadd.f32 %v1667_v6, %v4837_v32  ;;  %v1898_v1 = vpop.f32.mrf.mxu0 }
 0x169   : > { %v3567_v13 = vpop.f32.mrf.mxu1 }
 0x16a   : > { %v4998_v15 = vadd.f32 %v1895_v53, %v1794_v33  ;;  %v1797_v17 = vadd.f32 %v3567_v13, %v4844_v46  ;;  %v3604_v52 = vpop.f32.mrf.mxu0 }
 0x16b   : > { %v1670_v61 = vpop.f32.mrf.mxu1 }
 0x16c   : > { %v5001_v58 = vadd.f32 %v3601_v49, %v1797_v17  ;;  %v1795_v19 = vadd.f32 %v1670_v61, %v4849_v38  ;;  %v1911_v0 = vpop.f32.mrf.mxu0 }
 0x16d   : > { %v3570_v54 = vpop.f32.mrf.mxu1 }
 0x16e   : > { %v5004_v4 = vadd.f32 %v1898_v1, %v1795_v19  ;;  %v1800_v25 = vadd.f32 %v3570_v54, %v4854_v3  ;;  %v3605_v12 = vpop.f32.mrf.mxu0 }
 0x16f   : > { %v1683_v32 = vpop.f32.mrf.mxu1 }
 0x170   : > { %v5007_v41 = vadd.f32 %v3604_v52, %v1800_v25  ;;  %v1798_v37 = vadd.f32 %v1683_v32, %v4857_v9  ;;  %v1914_v48 = vpop.f32.mrf.mxu0 }
 0x171   : > { %v3571_v46 = vpop.f32.mrf.mxu1 }
 0x172   : > { %v5010_v5 = vadd.f32 %v1911_v0, %v1798_v37  ;;  %v1801_v28 = vadd.f32 %v3571_v46, %v4864_v36  ;;  %v3608_v21 = vpop.f32.mrf.mxu0 }
 0x173   : > { %v1686_v38 = vpop.f32.mrf.mxu1 }
 0x174   : > { %v5013_v45 = vadd.f32 %v3605_v12, %v1801_v28  ;;  %v1799_v22 = vadd.f32 %v1686_v38, %v4869_v14  ;;  %v1927_v27 = vpop.f32.mrf.mxu0 }
 0x175   : > { %v3574_v3 = vpop.f32.mrf.mxu1 }
 0x176   : > { %v5016_v8 = vadd.f32 %v1914_v48, %v1799_v22  ;;  %v1804_v63 = vadd.f32 %v3574_v3, %v4874_v42  ;;  %v3609_v40 = vpop.f32.mrf.mxu0 }
 0x177   : > { %v1699_v9 = vpop.f32.mrf.mxu1 }
 0x178   : > { %v5019_v11 = vadd.f32 %v3608_v21, %v1804_v63  ;;  %v1802_v53 = vadd.f32 %v1699_v9, %v4877_v24  ;;  %v1930_v18 = vpop.f32.mrf.mxu0 }
 0x179   : > { %v3575_v36 = vpop.f32.mrf.mxu1 }
 0x17a   : > { %v5022_v60 = vadd.f32 %v1927_v27, %v1802_v53  ;;  %v1805_v49 = vadd.f32 %v3575_v36, %v4884_v26  ;;  %v3612_v6 = vpop.f32.mrf.mxu0 }
 0x17b   : > { %v1702_v14 = vpop.f32.mrf.mxu1 }
 0x17c   : > { %v5025_v33 = vadd.f32 %v3609_v40, %v1805_v49  ;;  %v1803_v1 = vadd.f32 %v1702_v14, %v4889_v30  ;;  %v1943_v13 = vpop.f32.mrf.mxu0 }
 0x17d   : > { %v3578_v42 = vpop.f32.mrf.mxu1 }
 0x17e   : > { %v5028_v17 = vadd.f32 %v1930_v18, %v1803_v1  ;;  %v1808_v52 = vadd.f32 %v3578_v42, %v4894_v62  ;;  %v3613_v61 = vpop.f32.mrf.mxu0 }
 0x17f   : > { %v1715_v24 = vpop.f32.mrf.mxu1 }
 0x180   : > { %v5031_v19 = vadd.f32 %v3612_v6, %v1808_v52  ;;  %v1806_v0 = vadd.f32 %v1715_v24, %v4897_v34  ;;  %v1946_v54 = vpop.f32.mrf.mxu0 }
 0x181   : > { %v3579_v26 = vpop.f32.mrf.mxu1 }
 0x182   : > { %v5034_v25 = vadd.f32 %v1943_v13, %v1806_v0  ;;  %v1809_v12 = vadd.f32 %v3579_v26, %v4904_v35  ;;  %v3616_v32 = vpop.f32.mrf.mxu0 }
 0x183   : > { %v1718_v30 = vpop.f32.mrf.mxu1 }
 0x184   : > { %v5037_v37 = vadd.f32 %v3613_v61, %v1809_v12  ;;  %v1807_v48 = vadd.f32 %v1718_v30, %v4913_v39  ;;  %v1959_v46 = vpop.f32.mrf.mxu0 }
 0x185   : > { %v3582_v62 = vpop.f32.mrf.mxu1 }
 0x186   : > { %v5040_v28 = vadd.f32 %v1946_v54, %v1807_v48  ;;  %v1812_v21 = vadd.f32 %v3582_v62, %v4918_v23  ;;  %v3617_v38 = vpop.f32.mrf.mxu0 }
 0x187   : > { %v1731_v34 = vpop.f32.mrf.mxu1 }
 0x188   : > { %v5043_v22 = vadd.f32 %v3616_v32, %v1812_v21  ;;  %v1810_v27 = vadd.f32 %v1731_v34, %v4921_v56  ;;  %v1962_v3 = vpop.f32.mrf.mxu0 }
 0x189   : > { %v3583_v35 = vpop.f32.mrf.mxu1 }
 0x18a   : > { %v5046_v63 = vadd.f32 %v1959_v46, %v1810_v27  ;;  %v1813_v40 = vadd.f32 %v3583_v35, %v4930_v43  ;;  %v3620_v9 = vpop.f32.mrf.mxu0 }
 0x18b   : > { %v1734_v39 = vpop.f32.mrf.mxu1 }
 0x18c   : > { %v5049_v53 = vadd.f32 %v3617_v38, %v1813_v40  ;;  %v1811_v18 = vadd.f32 %v1734_v39, %v4935_v59  ;;  %v1975_v36 = vpop.f32.mrf.mxu0 }
 0x18d   : > { %v3586_v23 = vpop.f32.mrf.mxu1 }
 0x18e   : > { %5543 = vst [vmem:[#allocation9_spill] sm:$0xff] %v5049_v53  ;;  %v5052_v49 = vadd.f32 %v1962_v3, %v1811_v18  ;;  %v1816_v6 = vadd.f32 %v3586_v23, %v4941_v20  ;;  %v3621_v14 = vpop.f32.mrf.mxu0 }
 0x18f   : > { %v1747_v56 = vpop.f32.mrf.mxu1 }
 0x190   : > { %5544 = vst [vmem:[#allocation7_spill] sm:$0xff] %v5052_v49  ;;  %v5055_v1 = vadd.f32 %v3620_v9, %v1816_v6  ;;  %v1814_v13 = vadd.f32 %v1747_v56, %v4944_v55  ;;  %v1978_v42 = vpop.f32.mrf.mxu0 }
 0x191   : > { %v3587_v43 = vpop.f32.mrf.mxu1 }
 0x192   : > { %5545 = vst [vmem:[#allocation11_spill] sm:$0xff] %v5055_v1  ;;  %v5058_v52 = vadd.f32 %v1975_v36, %v1814_v13  ;;  %v1817_v61 = vadd.f32 %v3587_v43, %v4955_v10  ;;  %v3624_v24 = vpop.f32.mrf.mxu0 }
 0x193   : > { %v1750_v59 = vpop.f32.mrf.mxu1 }
 0x194   : > { %5546 = vst [vmem:[#allocation13_spill] sm:$0xff] %v5058_v52  ;;  %v5061_v0 = vadd.f32 %v3621_v14, %v1817_v61  ;;  %v1815_v54 = vadd.f32 %v1750_v59, %v4962_v44  ;;  %v1991_v26 = vpop.f32.mrf.mxu0 }
 0x195   : > { %v3590_v20 = vpop.f32.mrf.mxu1 }
 0x196   : > { %5547 = vst [vmem:[#allocation15_spill] sm:$0xff] %v5061_v0  ;;  %v5064_v12 = vadd.f32 %v1978_v42, %v1815_v54  ;;  %v1820_v32 = vadd.f32 %v3590_v20, %v4969_v57  ;;  %v3625_v30 = vpop.f32.mrf.mxu0 }
 0x197   : > { %v1763_v55 = vpop.f32.mrf.mxu1 }
 0x198   : > { %5548 = vst [vmem:[#allocation19_spill] sm:$0xff] %v5064_v12  ;;  %v5067_v48 = vadd.f32 %v3624_v24, %v1820_v32  ;;  %v1818_v46 = vadd.f32 %v1763_v55, %v4972_v16  ;;  %v1994_v62 = vpop.f32.mrf.mxu0 }
 0x199   : > { %v3591_v10 = vpop.f32.mrf.mxu1 }
 0x19a   : > { %5549 = vst [vmem:[#allocation24_spill] sm:$0xff] %v5067_v48  ;;  %v5070_v21 = vadd.f32 %v1991_v26, %v1818_v46  ;;  %v1821_v38 = vadd.f32 %v3591_v10, %v4976_v31  ;;  %v3628_v34 = vpop.f32.mrf.mxu0 }
 0x19b   : > { %v1766_v44 = vpop.f32.mrf.mxu1 }
 0x19c   : > { %5550 = vst [vmem:[#allocation5_spill] sm:$0xff] %v5070_v21  ;;  %v5073_v27 = vadd.f32 %v3625_v30, %v1821_v38  ;;  %v1819_v3 = vadd.f32 %v1766_v44, %v4980_v7  ;;  %v2007_v35 = vpop.f32.mrf.mxu0 }
 0x19d   : > { %v3594_v57 = vpop.f32.mrf.mxu1 }
 0x19e   : > { %5551 = vst [vmem:[#allocation10_spill] sm:$0xff] %v5073_v27  ;;  %v5076_v40 = vadd.f32 %v1994_v62, %v1819_v3  ;;  %v1824_v9 = vadd.f32 %v3594_v57, %v4983_v51  ;;  %v3629_v39 = vpop.f32.mrf.mxu0 }
 0x19f   : > { %v1779_v16 = vpop.f32.mrf.mxu1 }
 0x1a0   : > { %5552 = vst [vmem:[#allocation12_spill] sm:$0xff] %v5076_v40  ;;  %v5079_v18 = vadd.f32 %v3628_v34, %v1824_v9  ;;  %v1822_v36 = vadd.f32 %v1779_v16, %v4986_v50  ;;  %v2010_v23 = vpop.f32.mrf.mxu0 }
 0x1a1   : > { %v3595_v31 = vpop.f32.mrf.mxu1 }
 0x1a2   : > { %5553 = vst [vmem:[#allocation14_spill] sm:$0xff] %v5079_v18  ;;  %v5082_v6 = vadd.f32 %v2007_v35, %v1822_v36  ;;  %v1825_v14 = vadd.f32 %v3595_v31, %v4989_v2  ;;  %v5085_v56 = vpop.f32.mrf.mxu0 }
 0x1a3   : > { %v1782_v7 = vpop.f32.mrf.mxu1 }
 0x1a4   : > { %5554 = vst [vmem:[#allocation17_spill] sm:$0xff] %v5082_v6  ;;  %v5087_v13 = vadd.f32 %v3629_v39, %v1825_v14  ;;  %v1823_v42 = vadd.f32 %v1782_v7, %v4992_v47  ;;  %v5090_v51 = vpop.f32.mrf.mxu0 }
 0x1a5   : > { %v3634_v43 = vpop.f32.mrf.mxu1 }
 0x1a6   : > { %5555 = vst [vmem:[#allocation22_spill] sm:$0xff] %v5087_v13  ;;  %v5092_v61 = vadd.f32 %v2010_v23, %v1823_v42  ;;  %v5094_v24 = vpop.f32.mrf.mxu0 }
 0x1a7   : > { %v2107_v50 = vpop.f32.mrf.mxu1 }
 0x1a8   : > { %5556 = vst [vmem:[#allocation25_spill] sm:$0xff] %v5092_v61  ;;  %v5096_v59 = vpop.f32.mrf.mxu0 }
 0x1a9   : > { %v3635_v54 = vpop.f32.mrf.mxu1 }
 0x1aa   : > { %v5098_v26 = vpop.f32.mrf.mxu0 }
 0x1ab   : > { %v5100_v2 = vpop.f32.mrf.mxu1 }
 0x1ac   : > { %v5102_v20 = vpop.f32.mrf.mxu0 }
 0x1ad   : > { %v5104_v32 = vpop.f32.mrf.mxu1 }
 0x1ae   : > { %v5106_v47 = vpop.f32.mrf.mxu0 }
 0x1af   : > { %v5108_v30 = vpop.f32.mrf.mxu1 }
 0x1b0   : > { %v5110_v55 = vpop.f32.mrf.mxu0 }
 0x1b1   : > { %v5112_v46 = vpop.f32.mrf.mxu1 }
 0x1b2   : > { %v5114_v62 = vpop.f32.mrf.mxu0 }
 0x1b3   : > { %v5116_v10 = vpop.f32.mrf.mxu1 }
 0x1b4   : > { %v5118_v38 = vpop.f32.mrf.mxu0 }
 0x1b5   : > { %v5120_v34 = vpop.f32.mrf.mxu1 }
 0x1b6   : > { %v5122_v44 = vpop.f32.mrf.mxu0 }
 0x1b7   : > { %v5124_v3 = vpop.f32.mrf.mxu1 }
 0x1b8   : > { %v5126_v35 = vpop.f32.mrf.mxu0 }
 0x1b9   : > { %v5128_v57 = vpop.f32.mrf.mxu1 }
 0x1ba   : > { %v5130_v9 = vpop.f32.mrf.mxu0 }
 0x1bb   : > { %v5132_v39 = vpop.f32.mrf.mxu1 }
 0x1bc   : > { %v5134_v16 = vpop.f32.mrf.mxu0 }
 0x1bd   : > { %v5136_v36 = vpop.f32.mrf.mxu1 }
 0x1be   : > { %v5138_v23 = vpop.f32.mrf.mxu0 }
 0x1bf   : > { %v5140_v31 = vpop.f32.mrf.mxu1 }
 0x1c0   : > { %v5142_v14 = vpop.f32.mrf.mxu0 }
 0x1c1   : > { %v5144_v7 = vpop.f32.mrf.mxu1 }
 0x1c2   : > { %v5146_v42 = vpop.f32.mrf.mxu0 }
 0x1c3   : > { %5557 = vst [vmem:[#allocation2_spill] sm:$0xff] %v5146_v42  ;;  %v5148_v61 = vpop.f32.mrf.mxu1 }
 0x1c4   : > { %v5150_v13 = vpop.f32.mrf.mxu0 }
 0x1c5   : > { %5558 = vst [vmem:[#allocation20_spill] sm:$0xff] %v5150_v13  ;;  %v5152_v6 = vpop.f32.mrf.mxu1 }
 0x1c6   : > { %v5154_v18 = vpop.f32.mrf.mxu0 }
 0x1c7   : > { %5559 = vst [vmem:[#allocation16_spill] sm:$0xff] %v5154_v18  ;;  %v5156_v40 = vpop.f32.mrf.mxu1 }
 0x1c8   : > { %v5158_v27 = vpop.f32.mrf.mxu0 }
 0x1c9   : > { %5560 = vst [vmem:[#allocation18_spill] sm:$0xff] %v5158_v27  ;;  %v5160_v21 = vpop.f32.mrf.mxu1 }
 0x1ca   : > { %5561 = vst [vmem:[#allocation21_spill] sm:$0xff] %v5160_v21  ;;  %v5162_v48 = vpop.f32.mrf.mxu0 }
 0x1cb   : > { %5562 = vst [vmem:[#allocation23_spill] sm:$0xff] %v5162_v48  ;;  %v5164_v12 = vpop.f32.mrf.mxu1 }
 0x1cc   : > { %5563 = vst [vmem:[#allocation8_spill] sm:$0xff] %v5164_v12  ;;  %v5166_v0 = vpop.f32.mrf.mxu0 }
 0x1cd   : > { %5564 = vst [vmem:[#allocation3_spill] sm:$0xff] %v5166_v0  ;;  %v5168_v52 = vpop.f32.mrf.mxu1 }
 0x1ce   : > { %5565 = vst [vmem:[#allocation4_spill] sm:$0xff] %v5168_v52  ;;  %v5170_v1 = vpop.f32.mrf.mxu0 }
 0x1cf   : > { %5566 = vst [vmem:[#allocation6_spill] sm:$0xff] %v5170_v1  ;;  %v5172_v49 = vpop.f32.mrf.mxu1 }
 0x1d0   : > { %5567 = vst [vmem:[#allocation26_spill] sm:$0xff] %v5172_v49  ;;  %v5174_v13 = vpop.f32.mrf.mxu0 }
 0x1d1   : > { %5568 = vst [vmem:[#allocation27_spill] sm:$0xff] %v5174_v13  ;;  %v5176_v18 = vpop.f32.mrf.mxu1 }
 0x1d2   : > { %5569 = vst [vmem:[#allocation28_spill] sm:$0xff] %v5176_v18  ;;  %v5178_v53 = vpop.f32.mrf.mxu0 }
 0x1d3   : > { %5570 = vst [vmem:[#allocation29_spill] sm:$0xff] %v5178_v53  ;;  %v5180_v27 = vpop.f32.mrf.mxu1 }
 0x1d4   : > { %5571 = vst [vmem:[#allocation30_spill] sm:$0xff] %v5180_v27  ;;  %v5182_v21 = vpop.f32.mrf.mxu0 }
 0x1d5   : > { %5572 = vst [vmem:[#allocation31_spill] sm:$0xff] %v5182_v21  ;;  %v5184_v48 = vpop.f32.mrf.mxu1 }
 0x1d6   : > { %5573 = vst [vmem:[#allocation32_spill] sm:$0xff] %v5184_v48  ;;  %v5186_v12 = vpop.f32.mrf.mxu0 }
 0x1d7   : > { %5574 = vst [vmem:[#allocation33_spill] sm:$0xff] %v5186_v12  ;;  %v5188_v0 = vpop.f32.mrf.mxu1  ;;  %v2236_v12 = vadd.f32 %v3634_v43, %v4995_v29  ;;  %v2235_v29 = vadd.f32 %v5100_v2, %v5004_v4  ;;  %v2238_v4 = vadd.f32 %v5108_v30, %v5010_v5  ;;  %v2241_v5 = vadd.f32 %v5112_v46, %v5013_v45 }
 0x1d8   : > { %5575 = vst [vmem:[#allocation34_spill] sm:$0xff] %v5188_v0  ;;  %v5190_v52 = vpop.f32.mrf.mxu0 }
 0x1d9   : > { %5576 = vst [vmem:[#allocation35_spill] sm:$0xff] %v5190_v52  ;;  %v5192_v1 = vpop.f32.mrf.mxu1 }
 0x1da   : > { %5577 = vst [vmem:[#allocation36_spill] sm:$0xff] %v5192_v1  ;;  %v5194_v49 = vpop.f32.mrf.mxu0  ;;  %v2234_v1 = vadd.f32 %v2107_v50, %v4998_v15  ;;  %v2240_v15 = vadd.f32 %v5104_v32, %v5007_v41  ;;  %v5225_v50 = vld [vmem:[%s5423_s2] ss:$0 sm:$0xff] }
 0x1db   : > { %5578 = vst [vmem:[#allocation37_spill] sm:$0xff] %v5194_v49  ;;  %v5196_v13 = vpop.f32.mrf.mxu1 }
 0x1dc   : > { %5579 = vst [vmem:[#allocation38_spill] sm:$0xff] %v5196_v13  ;;  %v5198_v18 = vpop.f32.mrf.mxu0 }
 0x1dd   : > { %5580 = vst [vmem:[#allocation39_spill] sm:$0xff] %v5198_v18  ;;  %v5200_v53 = vpop.f32.mrf.mxu1  ;;  %v2442_v18 = vadd.f32 %v5085_v56, %v2236_v12 }
 0x1de   : > { %5581 = vst [vmem:[#allocation40_spill] sm:$0xff] %v5200_v53  ;;  %v5202_v21 = vpop.f32.mrf.mxu0  ;;  %v2237_v53 = vadd.f32 %v3635_v54, %v5001_v58 }
 0x1df   : > { %5582 = vst [vmem:[#allocation41_spill] sm:$0xff] %v5202_v21  ;;  %v5204_v48 = vpop.f32.mrf.mxu1  ;;  %v2440_v21 = vadd.f32 %v5090_v51, %v2234_v1 }
 0x1e0   : > { %v5207_v0 = vpop.f32.mrf.mxu0  ;;  %v2443_v58 = vadd.f32 %v5094_v24, %v2237_v53  ;;  %v2446_v24 = vadd.f32 %v5098_v26, %v2240_v15 }
 0x1e1   : > { %5583 = vst [vmem:[#allocation42_spill] sm:$0xff] %v5207_v0  ;;  %v5209_v52 = vpop.f32.mrf.mxu1 }
 0x1e2   : > { %v3736_v49 = vpop.f32.mrf.mxu0 }
 0x1e3   : > { %v5212_v27 = vpop.f32.mrf.mxu1 }
 0x1e4   : > { %v2753_v13 = vpop.f32.mrf.mxu0 }
 0x1e5   : > { %v3702_v42 = vpop.f32.mrf.mxu1 }
 0x1e6   : > { %v2670_v43 = vadd.f32 %v3702_v42, %v2442_v18  ;;  %v3737_v0 = vpop.f32.mrf.mxu0  ;;  %v2441_v18 = vadd.f32 %v5096_v59, %v2235_v29  ;;  %v2444_v29 = vadd.f32 %v5102_v20, %v2238_v4 }
 0x1e7   : > { %v2541_v12 = vpop.f32.mrf.mxu1 }
 0x1e8   : > { %v2882_v56 = vadd.f32 %v3736_v49, %v2670_v43  ;;  %v2668_v54 = vadd.f32 %v2541_v12, %v2440_v21  ;;  %v2756_v1 = vpop.f32.mrf.mxu0  ;;  %v2244_v12 = vadd.f32 %v5120_v34, %v5019_v11 }
 0x1e9   : > { %v3703_v41 = vpop.f32.mrf.mxu1 }
 0x1ea   : > { %v2921_v51 = vadd.f32 %v5225_v50, %v2882_v56  ;;  %v2880_v53 = vadd.f32 %v2753_v13, %v2668_v54  ;;  %v2671_v49 = vadd.f32 %v3703_v41, %v2443_v58  ;;  %v3740_v21 = vpop.f32.mrf.mxu0  ;;  %v2239_v13 = vadd.f32 %v5116_v10, %v5016_v8 }
 0x1eb   : > { %v2544_v2 = vpop.f32.mrf.mxu1  ;;  %v2447_v58 = vadd.f32 %v5106_v47, %v2241_v5  ;;  %v2242_v54 = vadd.f32 %v5124_v3, %v5022_v60 }
 0x1ec   : > { %2954 = vst.msk [vmem:[%s5233_s19 + $0x10] sm:$0xff] %vm2951_vm8, %v2921_v51  ;;  %v2919_v32 = vadd.f32 %v5225_v50, %v2880_v53  ;;  %v2883_v30 = vadd.f32 %v3737_v0, %v2671_v49  ;;  %v2669_v42 = vadd.f32 %v2544_v2, %v2441_v18  ;;  %v2769_v59 = vpop.f32.mrf.mxu0  ;;  %v2445_v4 = vadd.f32 %v5110_v55, %v2239_v13 }
 0x1ed   : > { %v3706_v43 = vpop.f32.mrf.mxu1  ;;  %v2450_v18 = vadd.f32 %v5114_v62, %v2244_v12  ;;  %v2245_v53 = vadd.f32 %v5128_v57, %v5025_v33  ;;  %v2243_v2 = vadd.f32 %v5132_v39, %v5028_v17 }
 0x1ee   : > { %2952 = vst.msk [vmem:[%s5233_s19] sm:$0xff] %vm2951_vm8, %v2919_v32  ;;  %v2922_v26 = vadd.f32 %v5225_v50, %v2883_v30  ;;  %v2881_v45 = vadd.f32 %v2756_v1, %v2669_v42  ;;  %v2674_v46 = vadd.f32 %v3706_v43, %v2446_v24  ;;  %v3741_v15 = vpop.f32.mrf.mxu0  ;;  %v2248_v32 = vadd.f32 %v5136_v36, %v5031_v19 }
 0x1ef   : > { %v2557_v0 = vpop.f32.mrf.mxu1  ;;  %v2451_v42 = vadd.f32 %v5122_v44, %v2245_v53  ;;  %v2449_v13 = vadd.f32 %v5126_v35, %v2243_v2  ;;  %v5585_v53 = vld [vmem:[#allocation9_spill] sm:$0xff]  ;;  %v5588_v2 = vld [vmem:[#allocation7_spill] sm:$0xff] }
 0x1f0   : > { %2955 = vst.msk [vmem:[%s5233_s19 + $0x18] sm:$0xff] %vm2951_vm8, %v2922_v26  ;;  %v2920_v20 = vadd.f32 %v5225_v50, %v2881_v45  ;;  %v2886_v8 = vadd.f32 %v3740_v21, %v2674_v46  ;;  %v2672_v10 = vadd.f32 %v2557_v0, %v2444_v29  ;;  %v2772_v56 = vpop.f32.mrf.mxu0  ;;  %v2448_v21 = vadd.f32 %v5118_v38, %v2242_v54 }
 0x1f1   : > { %v3707_v1 = vpop.f32.mrf.mxu1  ;;  %v2246_v29 = vadd.f32 %v5140_v31, %v5034_v25  ;;  %v2454_v45 = vadd.f32 %v5130_v9, %v2248_v32 }
 0x1f2   : > { %2953 = vst.msk [vmem:[%s5233_s19 + $0x8] sm:$0xff] %vm2951_vm8, %v2920_v20  ;;  %v2925_v11 = vadd.f32 %v5225_v50, %v2886_v8  ;;  %v2884_v47 = vadd.f32 %v2769_v59, %v2672_v10  ;;  %v2675_v34 = vadd.f32 %v3707_v1, %v2447_v58  ;;  %v3744_v41 = vpop.f32.mrf.mxu0  ;;  %v2247_v20 = vadd.f32 %v5148_v61, %v5040_v28 }
 0x1f3   : > { %v2560_v51 = vpop.f32.mrf.mxu1  ;;  %v2452_v0 = vadd.f32 %v5134_v16, %v2246_v29  ;;  %v2252_v10 = vadd.f32 %v5152_v6, %v5043_v22 }
 0x1f4   : > { %2958 = vst.msk [vmem:[%s5233_s19 + $0x30] sm:$0xff] %vm2951_vm8, %v2925_v11  ;;  %v2923_v60 = vadd.f32 %v5225_v50, %v2884_v47  ;;  %v2887_v55 = vadd.f32 %v3741_v15, %v2675_v34  ;;  %v2673_v3 = vadd.f32 %v2560_v51, %v2445_v4  ;;  %v2785_v49 = vpop.f32.mrf.mxu0  ;;  %v2249_v15 = vadd.f32 %v5144_v7, %v5037_v37 }
 0x1f5   : > { %v3710_v24 = vpop.f32.mrf.mxu1  ;;  %v2250_v4 = vadd.f32 %v5156_v40, %v5046_v63  ;;  %v2453_v47 = vadd.f32 %v5142_v14, %v2247_v20 }
 0x1f6   : > { %2956 = vst.msk [vmem:[%s5233_s19 + $0x20] sm:$0xff] %vm2951_vm8, %v2923_v60  ;;  %v2926_v62 = vadd.f32 %v5225_v50, %v2887_v55  ;;  %v2885_v33 = vadd.f32 %v2772_v56, %v2673_v3  ;;  %v2678_v57 = vadd.f32 %v3710_v24, %v2450_v18  ;;  %v3745_v5 = vpop.f32.mrf.mxu0  ;;  %v2455_v54 = vadd.f32 %v5138_v23, %v2249_v15  ;;  %v5586_v60 = vld [vmem:[#allocation21_spill] sm:$0xff]  ;;  %v5595_v15 = vld [vmem:[#allocation18_spill] sm:$0xff] }
 0x1f7   : > { %v2573_v30 = vpop.f32.mrf.mxu1  ;;  %v2253_v55 = vadd.f32 %v5586_v60, %v5585_v53  ;;  %v5604_v60 = vld [vmem:[#allocation6_spill] sm:$0xff] }
 0x1f8   : > { %2959 = vst.msk [vmem:[%s5233_s19 + $0x38] sm:$0xff] %vm2951_vm8, %v2926_v62  ;;  %v2924_v38 = vadd.f32 %v5225_v50, %v2885_v33  ;;  %v2890_v17 = vadd.f32 %v3744_v41, %v2678_v57  ;;  %v2676_v39 = vadd.f32 %v2573_v30, %v2448_v21  ;;  %v2788_v59 = vpop.f32.mrf.mxu0  ;;  %v5584_v41 = vld [vmem:[#allocation2_spill] sm:$0xff]  ;;  %v5589_v62 = vld [vmem:[#allocation8_spill] sm:$0xff] }
 0x1f9   : > { %v3711_v43 = vpop.f32.mrf.mxu1  ;;  %v2458_v18 = vadd.f32 %v5584_v41, %v2252_v10  ;;  %v2251_v33 = vadd.f32 %v5589_v62, %v5588_v2  ;;  %v5602_v41 = vld [vmem:[#allocation24_spill] sm:$0xff]  ;;  %v5607_v62 = vld [vmem:[#allocation27_spill] sm:$0xff] }
 0x1fa   : > { %2957 = vst.msk [vmem:[%s5233_s19 + $0x28] sm:$0xff] %vm2951_vm8, %v2924_v38  ;;  %v2929_v19 = vadd.f32 %v5225_v50, %v2890_v17  ;;  %v2888_v44 = vadd.f32 %v2785_v49, %v2676_v39  ;;  %v2679_v36 = vadd.f32 %v3711_v43, %v2451_v42  ;;  %v3748_v26 = vpop.f32.mrf.mxu0  ;;  %v5587_v49 = vld [vmem:[#allocation20_spill] sm:$0xff]  ;;  %v5590_v42 = vld [vmem:[#allocation11_spill] sm:$0xff] }
 0x1fb   : > { %v2576_v46 = vpop.f32.mrf.mxu1  ;;  %v2456_v21 = vadd.f32 %v5587_v49, %v2250_v4  ;;  %v5591_v38 = vld [vmem:[#allocation4_spill] sm:$0xff]  ;;  %v5600_v4 = vld [vmem:[#allocation19_spill] sm:$0xff]  ;;  %v5605_v49 = vld [vmem:[#allocation5_spill] sm:$0xff] }
 0x1fc   : > { %2962 = vst.msk [vmem:[%s5233_s19 + $0x50] sm:$0xff] %vm2951_vm8, %v2929_v19  ;;  %v2927_v25 = vadd.f32 %v5225_v50, %v2888_v44  ;;  %v2891_v35 = vadd.f32 %v3745_v5, %v2679_v36  ;;  %v2677_v31 = vadd.f32 %v2576_v46, %v2449_v13  ;;  %v2801_v12 = vpop.f32.mrf.mxu0  ;;  %v2256_v17 = vadd.f32 %v5591_v38, %v5590_v42  ;;  %v5593_v36 = vld [vmem:[#allocation13_spill] sm:$0xff] }
 0x1fd   : > { %v3714_v58 = vpop.f32.mrf.mxu1  ;;  %v5608_v42 = vld [vmem:[#allocation29_spill] sm:$0xff] }
 0x1fe   : > { %2960 = vst.msk [vmem:[%s5233_s19 + $0x40] sm:$0xff] %vm2951_vm8, %v2927_v25  ;;  %v2930_v9 = vadd.f32 %v5225_v50, %v2891_v35  ;;  %v2889_v37 = vadd.f32 %v2788_v59, %v2677_v31  ;;  %v2682_v7 = vadd.f32 %v3714_v58, %v2454_v45  ;;  %v3749_v8 = vpop.f32.mrf.mxu0  ;;  %v5592_v59 = vld [vmem:[#allocation16_spill] sm:$0xff]  ;;  %v2457_v25 = vadd.f32 %v5595_v15, %v2251_v33  ;;  %v5596_v58 = vld [vmem:[#allocation23_spill] sm:$0xff]  ;;  %v5613_v15 = vld [vmem:[#allocation38_spill] sm:$0xff] }
 0x1ff   : > { %v2589_v56 = vpop.f32.mrf.mxu1  ;;  %v2459_v29 = vadd.f32 %v5592_v59, %v2253_v55  ;;  %v2462_v20 = vadd.f32 %v5596_v58, %v2256_v17  ;;  %v5610_v59 = vld [vmem:[#allocation36_spill] sm:$0xff]  ;;  %v5614_v58 = vld [vmem:[#allocation14_spill] sm:$0xff] }
 0x200   : > { %2963 = vst.msk [vmem:[%s5233_s19 + $0x58] sm:$0xff] %vm2951_vm8, %v2930_v9  ;;  %v2928_v16 = vadd.f32 %v5225_v50, %v2889_v37  ;;  %v2894_v28 = vadd.f32 %v3748_v26, %v2682_v7  ;;  %v2680_v61 = vadd.f32 %v2589_v56, %v2452_v0  ;;  %v2804_v1 = vpop.f32.mrf.mxu0  ;;  %v5594_v26 = vld [vmem:[#allocation26_spill] sm:$0xff]  ;;  %v5597_v37 = vld [vmem:[#allocation15_spill] sm:$0xff]  ;;  %v5598_v7 = vld [vmem:[#allocation28_spill] sm:$0xff] }
 0x201   : > { %v3715_v11 = vpop.f32.mrf.mxu1  ;;  %v2254_v45 = vadd.f32 %v5594_v26, %v5593_v36  ;;  %v5611_v36 = vld [vmem:[#allocation31_spill] sm:$0xff] }
 0x202   : > { %2961 = vst.msk [vmem:[%s5233_s19 + $0x48] sm:$0xff] %vm2951_vm8, %v2928_v16  ;;  %v2933_v22 = vadd.f32 %v5225_v50, %v2894_v28  ;;  %v2892_v6 = vadd.f32 %v2801_v12, %v2680_v61  ;;  %v2683_v23 = vadd.f32 %v3715_v11, %v2455_v54  ;;  %v3752_v34 = vpop.f32.mrf.mxu0  ;;  %v5599_v28 = vld [vmem:[#allocation3_spill] sm:$0xff]  ;;  %v5601_v11 = vld [vmem:[#allocation30_spill] sm:$0xff] }
 0x203   : > { %v2592_v51 = vpop.f32.mrf.mxu1  ;;  %v2460_v61 = vadd.f32 %v5599_v28, %v2254_v45  ;;  %v5617_v28 = vld [vmem:[#allocation17_spill] sm:$0xff] }
 0x204   : > { %2966 = vst.msk [vmem:[%s5233_s19 + $0x70] sm:$0xff] %vm2951_vm8, %v2933_v22  ;;  %v2931_v63 = vadd.f32 %v5225_v50, %v2892_v6  ;;  %v2895_v40 = vadd.f32 %v3749_v8, %v2683_v23  ;;  %v2681_v14 = vadd.f32 %v2592_v51, %v2453_v47  ;;  %v2817_v3 = vpop.f32.mrf.mxu0  ;;  %v2257_v8 = vadd.f32 %v5598_v7, %v5597_v37  ;;  %v5616_v7 = vld [vmem:[#allocation33_spill] sm:$0xff] }
 0x205   : > { %v3718_v24 = vpop.f32.mrf.mxu1  ;;  %v2255_v47 = vadd.f32 %v5601_v11, %v5600_v4  ;;  %v5618_v4 = vld [vmem:[#allocation35_spill] sm:$0xff] }
 0x206   : > { %2964 = vst.msk [vmem:[%s5233_s19 + $0x60] sm:$0xff] %vm2951_vm8, %v2931_v63  ;;  %v2934_v57 = vadd.f32 %v5225_v50, %v2895_v40  ;;  %v2893_v5 = vadd.f32 %v2804_v1, %v2681_v14  ;;  %v2686_v32 = vadd.f32 %v3718_v24, %v2458_v18  ;;  %v3753_v30 = vpop.f32.mrf.mxu0  ;;  %v5603_v18 = vld [vmem:[#allocation32_spill] sm:$0xff]  ;;  %v2463_v55 = vadd.f32 %v5604_v60, %v2257_v8 }
 0x207   : > { %v2605_v39 = vpop.f32.mrf.mxu1  ;;  %v2260_v51 = vadd.f32 %v5603_v18, %v5602_v41  ;;  %v2461_v33 = vadd.f32 %v5607_v62, %v2255_v47 }
 0x208   : > { %2967 = vst.msk [vmem:[%s5233_s19 + $0x78] sm:$0xff] %vm2951_vm8, %v2934_v57  ;;  %v2932_v43 = vadd.f32 %v5225_v50, %v2893_v5  ;;  %v2898_v13 = vadd.f32 %v3752_v34, %v2686_v32  ;;  %v2684_v19 = vadd.f32 %v2605_v39, %v2456_v21  ;;  %v2820_v44 = vpop.f32.mrf.mxu0  ;;  %v5606_v21 = vld [vmem:[#allocation34_spill] sm:$0xff] }
 0x209   : > { %v3719_v46 = vpop.f32.mrf.mxu1  ;;  %v2258_v24 = vadd.f32 %v5606_v21, %v5605_v49  ;;  %v2466_v38 = vadd.f32 %v5608_v42, %v2260_v51  ;;  %v5609_v39 = vld [vmem:[#allocation10_spill] sm:$0xff]  ;;  %v5622_v49 = vld [vmem:[#allocation25_spill] sm:$0xff] }
 0x20a   : > { %2965 = vst.msk [vmem:[%s5233_s19 + $0x68] sm:$0xff] %vm2951_vm8, %v2932_v43  ;;  %v2937_v35 = vadd.f32 %v5225_v50, %v2898_v13  ;;  %v2896_v31 = vadd.f32 %v2817_v3, %v2684_v19  ;;  %v2687_v12 = vadd.f32 %v3719_v46, %v2459_v29  ;;  %v3756_v0 = vpop.f32.mrf.mxu0  ;;  %v2261_v29 = vadd.f32 %v5610_v59, %v5609_v39  ;;  %v5612_v46 = vld [vmem:[#allocation12_spill] sm:$0xff]  ;;  %v5620_v51 = vld [vmem:[#allocation22_spill] sm:$0xff] }
 0x20b   : > { %v2608_v9 = vpop.f32.mrf.mxu1  ;;  %v2464_v26 = vadd.f32 %v5611_v36, %v2258_v24  ;;  %v2263_v21 = vadd.f32 %v5212_v27, %v5622_v49 }
 0x20c   : > { %2970 = vst.msk [vmem:[%s5233_s19 + $0x90] sm:$0xff] %vm2951_vm8, %v2937_v35  ;;  %v2935_v10 = vadd.f32 %v5225_v50, %v2896_v31  ;;  %v2899_v56 = vadd.f32 %v3753_v30, %v2687_v12  ;;  %v2685_v54 = vadd.f32 %v2608_v9, %v2457_v25  ;;  %v2833_v16 = vpop.f32.mrf.mxu0  ;;  %v2259_v25 = vadd.f32 %v5613_v15, %v5612_v46 }
 0x20d   : > { %v3722_v1 = vpop.f32.mrf.mxu1  ;;  %v2467_v8 = vadd.f32 %v5616_v7, %v2261_v29 }
 0x20e   : > { %2968 = vst.msk [vmem:[%s5233_s19 + $0x80] sm:$0xff] %vm2951_vm8, %v2935_v10  ;;  %v2938_v22 = vadd.f32 %v5225_v50, %v2899_v56  ;;  %v2897_v6 = vadd.f32 %v2820_v44, %v2685_v54  ;;  %v2690_v23 = vadd.f32 %v3722_v1, %v2462_v20  ;;  %v3757_v34 = vpop.f32.mrf.mxu0  ;;  %v5615_v20 = vld [vmem:[#allocation40_spill] sm:$0xff]  ;;  %v2465_v11 = vadd.f32 %v5618_v4, %v2259_v25 }
 0x20f   : > { %v2621_v53 = vpop.f32.mrf.mxu1  ;;  %v2264_v9 = vadd.f32 %v5615_v20, %v5614_v58 }
 0x210   : > { %2971 = vst.msk [vmem:[%s5233_s19 + $0x98] sm:$0xff] %vm2951_vm8, %v2938_v22  ;;  %v2936_v63 = vadd.f32 %v5225_v50, %v2897_v6  ;;  %v2902_v40 = vadd.f32 %v3756_v0, %v2690_v23  ;;  %v2688_v14 = vadd.f32 %v2621_v53, %v2460_v61  ;;  %v2836_v3 = vpop.f32.mrf.mxu0  ;;  %v2262_v61 = vadd.f32 %v5204_v48, %v5617_v28 }
 0x211   : > { %v3723_v2 = vpop.f32.mrf.mxu1  ;;  %v2265_v53 = vadd.f32 %v5209_v52, %v5620_v51 }
 0x212   : > { %2969 = vst.msk [vmem:[%s5233_s19 + $0x88] sm:$0xff] %vm2951_vm8, %v2936_v63  ;;  %v2941_v57 = vadd.f32 %v5225_v50, %v2902_v40  ;;  %v2900_v5 = vadd.f32 %v2833_v16, %v2688_v14  ;;  %v2691_v32 = vadd.f32 %v3723_v2, %v2463_v55  ;;  %v3760_v30 = vpop.f32.mrf.mxu0  ;;  %v5621_v63 = vld [vmem:[#allocation39_spill] sm:$0xff] }
 0x213   : > { %v2624_v17 = vpop.f32.mrf.mxu1  ;;  %v2468_v40 = vadd.f32 %v5621_v63, %v2262_v61 }
 0x214   : > { %2974 = vst.msk [vmem:[%s5233_s19 + $0xb0] sm:$0xff] %vm2951_vm8, %v2941_v57  ;;  %v2939_v43 = vadd.f32 %v5225_v50, %v2900_v5  ;;  %v2903_v13 = vadd.f32 %v3757_v34, %v2691_v32  ;;  %v2689_v19 = vadd.f32 %v2624_v17, %v2461_v33  ;;  %v2849_v44 = vpop.f32.mrf.mxu0  ;;  %v5619_v34 = vld [vmem:[#allocation37_spill] sm:$0xff] }
 0x215   : > { %v3726_v45 = vpop.f32.mrf.mxu1  ;;  %v2470_v41 = vadd.f32 %v5619_v34, %v2264_v9  ;;  %v5623_v33 = vld [vmem:[#allocation41_spill] sm:$0xff] }
 0x216   : > { %2972 = vst.msk [vmem:[%s5233_s19 + $0xa0] sm:$0xff] %vm2951_vm8, %v2939_v43  ;;  %v2942_v35 = vadd.f32 %v5225_v50, %v2903_v13  ;;  %v2901_v31 = vadd.f32 %v2836_v3, %v2689_v19  ;;  %v2694_v12 = vadd.f32 %v3726_v45, %v2466_v38  ;;  %v3761_v0 = vpop.f32.mrf.mxu0  ;;  %v2471_v57 = vadd.f32 %v5623_v33, %v2265_v53  ;;  %v5624_v38 = vld [vmem:[#allocation42_spill] sm:$0xff] }
 0x217   : > { %v2637_v37 = vpop.f32.mrf.mxu1  ;;  %v2469_v17 = vadd.f32 %v5624_v38, %v2263_v21 }
 0x218   : > { %2975 = vst.msk [vmem:[%s5233_s19 + $0xb8] sm:$0xff] %vm2951_vm8, %v2942_v35  ;;  %v2940_v10 = vadd.f32 %v5225_v50, %v2901_v31  ;;  %v2906_v56 = vadd.f32 %v3760_v30, %v2694_v12  ;;  %v2692_v54 = vadd.f32 %v2637_v37, %v2464_v26  ;;  %v2852_v16 = vpop.f32.mrf.mxu0 }
 0x219   : > { %v3727_v1 = vpop.f32.mrf.mxu1 }
 0x21a   : > { %2973 = vst.msk [vmem:[%s5233_s19 + $0xa8] sm:$0xff] %vm2951_vm8, %v2940_v10  ;;  %v2945_v47 = vadd.f32 %v5225_v50, %v2906_v56  ;;  %v2904_v22 = vadd.f32 %v2849_v44, %v2692_v54  ;;  %v2695_v6 = vadd.f32 %v3727_v1, %v2467_v8  ;;  %v3764_v23 = vpop.f32.mrf.mxu0 }
 0x21b   : > { %v2640_v18 = vpop.f32.mrf.mxu1 }
 0x21c   : > { %2978 = vst.msk [vmem:[%s5233_s19 + $0xd0] sm:$0xff] %vm2951_vm8, %v2945_v47  ;;  %v2943_v48 = vadd.f32 %v5225_v50, %v2904_v22  ;;  %v2907_v60 = vadd.f32 %v3761_v0, %v2695_v6  ;;  %v2693_v55 = vadd.f32 %v2640_v18, %v2465_v11  ;;  %v2865_v3 = vpop.f32.mrf.mxu0 }
 0x21d   : > { %v3730_v14 = vpop.f32.mrf.mxu1 }
 0x21e   : > { %2976 = vst.msk [vmem:[%s5233_s19 + $0xc0] sm:$0xff] %vm2951_vm8, %v2943_v48  ;;  %v2946_v24 = vadd.f32 %v5225_v50, %v2907_v60  ;;  %v2905_v2 = vadd.f32 %v2852_v16, %v2693_v55  ;;  %v2698_v52 = vadd.f32 %v3730_v14, %v2470_v41  ;;  %v3765_v27 = vpop.f32.mrf.mxu0 }
 0x21f   : > { %v2653_v62 = vpop.f32.mrf.mxu1 }
 0x220   : > { %2979 = vst.msk [vmem:[%s5233_s19 + $0xd8] sm:$0xff] %vm2951_vm8, %v2946_v24  ;;  %v2944_v5 = vadd.f32 %v5225_v50, %v2905_v2  ;;  %v2910_v32 = vadd.f32 %v3764_v23, %v2698_v52  ;;  %v2696_v30 = vadd.f32 %v2653_v62, %v2468_v40  ;;  %v2868_v36 = vpop.f32.mrf.mxu0 }
 0x221   : > { %v3731_v42 = vpop.f32.mrf.mxu1 }
 0x222   : > { %2977 = vst.msk [vmem:[%s5233_s19 + $0xc8] sm:$0xff] %vm2951_vm8, %v2944_v5  ;;  %v2949_v39 = vadd.f32 %v5225_v50, %v2910_v32  ;;  %v2908_v59 = vadd.f32 %v2865_v3, %v2696_v30  ;;  %v2699_v29 = vadd.f32 %v3731_v42, %v2471_v57 }
 0x223   : > { %v2656_v43 = vpop.f32.mrf.mxu1 }
 0x224   : > { %2982 = vst.msk [vmem:[%s5233_s19 + $0xf0] sm:$0xff] %vm2951_vm8, %v2949_v39  ;;  %v2947_v13 = vadd.f32 %v5225_v50, %v2908_v59  ;;  %v2911_v19 = vadd.f32 %v3765_v27, %v2699_v29  ;;  %v2697_v44 = vadd.f32 %v2656_v43, %v2469_v17 }
 0x226   : > { %2980 = vst.msk [vmem:[%s5233_s19 + $0xe0] sm:$0xff] %vm2951_vm8, %v2947_v13  ;;  %v2950_v26 = vadd.f32 %v5225_v50, %v2911_v19  ;;  %v2909_v45 = vadd.f32 %v2868_v36, %v2697_v44 }
 0x228   : > { %2983 = vst.msk [vmem:[%s5233_s19 + $0xf8] sm:$0xff] %vm2951_vm8, %v2950_v26  ;;  %v2948_v46 = vadd.f32 %v5225_v50, %v2909_v45 }
 0x22a   : > { %2981 = vst.msk [vmem:[%s5233_s19 + $0xe8] sm:$0xff] %vm2951_vm8, %v2948_v46 }
 0x22b PF: > { %s13_s14 = sadd.s32 1, %s3843_s14   ;;  %s5625_s12 = smov %s3839_s13 }
 0x22c   : > { %p10_p5 = scmp.ge.s32.totalorder %s13_s14, 4   ;;  %s5626_s13 = smov %s5628_s15 }
 0x22e   :  { %12 = sbr.rel (!%p10_p5) target bundleno = 2 (0x2), region = 70 }

</bundles_post_ra>
